<compile_context>
chip_gen: v5e
topology: v5e:2x2
jax: 0.10.0
libtpu: 0.0.40
codegen_flags: <defaults>
</compile_context>

<pallas_src>
import functools

import jax
import jax.numpy as jnp
from jax import lax
from jax.experimental import pallas as pl
from jax.experimental.pallas import tpu as pltpu


def _round_up(x, m):
    return ((x + m - 1) // m) * m


def _vmem_limit_bytes():
    # Always return a value: v5e's default scoped limit is only 16 MiB and
    # v7x has 64 MiB physical VMEM per TensorCore (leave headroom).
    try:
        cap = int(pltpu.get_tpu_info().vmem_capacity_bytes)
        return min(cap * 3 // 4, 96 * 1024 * 1024)
    except Exception:
        return 48 * 1024 * 1024


def _block_kernel(xpad_ref, xres_ref, wdw_ref, bdw_ref, lnw_ref, lnb_ref,
                  w1_ref, b1_ref, w2_ref, b2_ref, gamma_ref,
                  out_ref, xn_ref,
                  *, W, C, K, TH, eps, approx_gelu, mm_dtype):
    # Shapes (per grid step (n, h)):
    #   xpad_ref : (1, H+2P, W+2P, Cp)  whole padded image, resident across h
    #   xres_ref : (1, TH*W, Cp)        lane-dense residual tile
    #   wdw_ref  : (K, K, Cp)           depthwise conv weights (pad chans = 0)
    #   bdw/lnw/lnb/b2/gamma : (1, Cp)  ;  b1 : (1, Hdp)
    #   w1 : (Cp, Hdp)   w2 : (Hdp, Cp)   (bf16 by default, f32 accumulate)
    #   out_ref  : (1, TH*W, Cp)        lane-dense flattened row tile
    #   xn_ref   : (TH*W, Cp) VMEM scratch holding LayerNorm output (MXU input)
    Cp = out_ref.shape[-1]
    row0 = pl.multiple_of(pl.program_id(1) * TH, TH)   # first output row of tile

    wdw = wdw_ref[...]                    # (K, K, Cp): K vregs, live across rows
    bdw = bdw_ref[0]                      # (Cp,)
    lnw = lnw_ref[0]
    lnb = lnb_ref[0]
    inv_c = 1.0 / C

    # ---- depthwise KxK conv + LayerNorm, one output row at a time ----------
    # The (1, W, Cp) f32 accumulator stays vreg-resident; row slabs are loaded
    # straight from the resident padded image ref so the vld co-issues with the
    # VALU MACs.  A fori_loop (not a Python unroll) bounds live ranges per row.
    def conv_ln_row(r, carry):
        base = row0 + r
        acc = jnp.zeros((1, W, Cp), jnp.float32)
        for kh in range(K):
            slab = xpad_ref[0, pl.ds(base + kh, 1), :, :]       # (1, W+2P, Cp)
            for kw in range(K):
                # TODO(synk): move this static sublane shift onto the XLU
                # (pltpu.roll) so it co-issues with the VPU MACs.
                acc = acc + slab[:, kw:kw + W, :] * wdw[kh, kw]
        x = acc[0] + bdw                                        # (W, Cp) f32

        # LayerNorm over the *real* C channels (channels_last).  Padded
        # channels are exactly zero after the conv (zero weights/bias), so
        # sums over Cp equal sums over C; var = E[x^2] - u^2 avoids a masked
        # (x - u) pass, and zero-padded lnw/lnb keep padded lanes at 0.
        u = jnp.sum(x, axis=-1, keepdims=True) * inv_c
        var = jnp.sum(x * x, axis=-1, keepdims=True) * inv_c - u * u
        xn = (x - u) * lax.rsqrt(var + eps) * lnw + lnb

        off = r * W
        if W % 8 == 0:
            off = pl.multiple_of(off, 8)                        # aligned store
        xn_ref[pl.ds(off, W), :] = xn.astype(xn_ref.dtype)
        return carry

    lax.fori_loop(0, TH, conv_ln_row, 0)

    # ---- pointwise MLP: Linear -> GELU -> Linear (MXU, f32 accumulate) -----
    xm = xn_ref[...]                                            # (TH*W, Cp)
    h1 = jnp.dot(xm, w1_ref[...],
                 preferred_element_type=jnp.float32) + b1_ref[0]
    h1 = jax.nn.gelu(h1, approximate=approx_gelu)               # tanh -> EUP
    h2 = jnp.dot(h1.astype(mm_dtype), w2_ref[...],
                 preferred_element_type=jnp.float32) + b2_ref[0]

    # ---- layer scale + residual (own aligned lane-dense stream) ------------
    out_ref[0] = xres_ref[0] + h2 * gamma_ref[0]


def convnext_block(x_nchw, params, *, kernel_size=7, padding=3, eps=1e-6,
                   row_tile=None, use_bf16_matmul=True, approx_gelu=True,
                   interpret=False):
    """x_nchw: (N, C, H, W) float32.  Returns (N, C, H, W)."""
    N, C, H, W = x_nchw.shape
    K = kernel_size
    PAD = padding
    Hd = params["w1"].shape[1]
    Cout = params["w2"].shape[1]
    assert Cout == C, "residual add requires out_dim == dim"

    Cp = _round_up(C, 128)        # lane-dense channels (stores + MXU K/N dims)
    Hdp = _round_up(Hd, 128)      # MXU-aligned hidden dim

    if row_tile is None:
        # Keep the MXU M-tile around 256-512 pixels; the conv works row-by-row
        # into the VMEM scratch, so TH no longer inflates the VPU working set.
        cands = [t for t in range(1, H + 1)
                 if H % t == 0 and (t * W) % 8 == 0 and t * W <= 512]
        row_tile = max(cands) if cands else H
    TH = row_tile
    assert H % TH == 0, "row_tile must divide H"
    nH = H // TH
    assert nH == 1 or (TH * W) % 8 == 0, \
        "row tile must give a sublane-aligned (TH*W) block when H is tiled"

    Hp, Wp = H + 2 * PAD, W + 2 * PAD
    f32 = jnp.float32
    mm_dtype = jnp.bfloat16 if use_bf16_matmul else f32

    # NCHW -> NHWC; halo + channel pad for the conv input, channel pad +
    # flatten for the lane-dense residual stream.
    x_nhwc = jnp.transpose(x_nchw, (0, 2, 3, 1)).astype(f32)
    x_pad = jnp.pad(x_nhwc, ((0, 0), (PAD, PAD), (PAD, PAD), (0, Cp - C)))
    x_res = jnp.pad(x_nhwc, ((0, 0), (0, 0), (0, 0), (0, Cp - C))
                    ).reshape(N, H * W, Cp)

    w_dw = jnp.pad(params["w_dw"].astype(f32), ((0, 0), (0, 0), (0, Cp - C)))
    b_dw = jnp.pad(params["b_dw"].astype(f32), ((0, Cp - C),)).reshape(1, Cp)
    ln_w = jnp.pad(params["ln_w"].astype(f32), ((0, Cp - C),)).reshape(1, Cp)
    ln_b = jnp.pad(params["ln_b"].astype(f32), ((0, Cp - C),)).reshape(1, Cp)
    w1 = jnp.pad(params["w1"].astype(f32),
                 ((0, Cp - C), (0, Hdp - Hd))).astype(mm_dtype)
    b1 = jnp.pad(params["b1"].astype(f32), ((0, Hdp - Hd),)).reshape(1, Hdp)
    w2 = jnp.pad(params["w2"].astype(f32),
                 ((0, Hdp - Hd), (0, Cp - C))).astype(mm_dtype)
    b2 = jnp.pad(params["b2"].astype(f32), ((0, Cp - C),)).reshape(1, Cp)
    gamma = jnp.pad(params["gamma"].astype(f32), ((0, Cp - C),)).reshape(1, Cp)

    kernel = functools.partial(_block_kernel, W=W, C=C, K=K, TH=TH, eps=eps,
                               approx_gelu=approx_gelu, mm_dtype=mm_dtype)

    out_flat = pl.pallas_call(
        kernel,
        out_shape=jax.ShapeDtypeStruct((N, H * W, Cp), f32),
        grid_spec=pltpu.PrefetchScalarGridSpec(
            num_scalar_prefetch=0,
            grid=(N, nH),
            in_specs=[
                # Whole padded image stays VMEM-resident across the h axis
                # (index map ignores h) -> DMA'd once per image; conv taps are
                # read from it by dynamic row slices.
                pl.BlockSpec((1, Hp, Wp, Cp), lambda n, h: (n, 0, 0, 0)),
                pl.BlockSpec((1, TH * W, Cp), lambda n, h: (n, h, 0)),  # residual
                pl.BlockSpec((K, K, Cp), lambda n, h: (0, 0, 0)),       # dw weight
                pl.BlockSpec((1, Cp), lambda n, h: (0, 0)),             # dw bias
                pl.BlockSpec((1, Cp), lambda n, h: (0, 0)),             # ln weight
                pl.BlockSpec((1, Cp), lambda n, h: (0, 0)),             # ln bias
                pl.BlockSpec((Cp, Hdp), lambda n, h: (0, 0)),           # w1
                pl.BlockSpec((1, Hdp), lambda n, h: (0, 0)),            # b1
                pl.BlockSpec((Hdp, Cp), lambda n, h: (0, 0)),           # w2
                pl.BlockSpec((1, Cp), lambda n, h: (0, 0)),             # b2
                pl.BlockSpec((1, Cp), lambda n, h: (0, 0)),             # gamma
            ],
            out_specs=pl.BlockSpec((1, TH * W, Cp), lambda n, h: (n, h, 0)),
            scratch_shapes=[pltpu.VMEM((TH * W, Cp), mm_dtype)],
        ),
        compiler_params=pltpu.CompilerParams(
            # "arbitrary" on the row axis: v7x megacore splits along N only,
            # so the resident padded image is DMA'd once per image per core.
            dimension_semantics=("parallel", "arbitrary"),
            vmem_limit_bytes=_vmem_limit_bytes()),
        interpret=interpret,
    )(x_pad, x_res, w_dw, b_dw, ln_w, ln_b, w1, b1, w2, b2, gamma)

    out_nhwc = out_flat.reshape(N, H, W, Cp)[..., :C]
    return jnp.transpose(out_nhwc, (0, 3, 1, 2))                 # back to NCHW


def _reference(x_nchw, params, *, kernel_size=7, padding=3, eps=1e-6):
    """Pure-JAX reference mirroring the PyTorch Block forward (f32, exact GELU)."""
    N, C, H, W = x_nchw.shape
    K = kernel_size
    x_nhwc = jnp.transpose(x_nchw, (0, 2, 3, 1))
    xp = jnp.pad(x_nhwc, ((0, 0), (padding, padding), (padding, padding), (0, 0)))
    acc = jnp.zeros_like(x_nhwc)
    for kh in range(K):
        for kw in range(K):
            acc = acc + xp[:, kh:kh + H, kw:kw + W, :] * params["w_dw"][kh, kw]
    acc = acc + params["b_dw"]
    u = jnp.mean(acc, axis=-1, keepdims=True)
    xc = acc - u
    var = jnp.mean(xc * xc, axis=-1, keepdims=True)
    xn = xc / jnp.sqrt(var + eps) * params["ln_w"] + params["ln_b"]
    h1 = jax.nn.gelu(xn @ params["w1"] + params["b1"], approximate=False)
    h2 = h1 @ params["w2"] + params["b2"]
    h2 = h2 * params["gamma"]
    out = x_nhwc + h2
    return jnp.transpose(out, (0, 3, 1, 2))


def make_params(key, dim, out_dim, expand_factor=2, kernel_size=7,
                layer_scale_init_value=1e-6):
    hidden = expand_factor * dim
    ks = jax.random.split(key, 6)
    return {
        # nn.Conv2d(dim, dim, K, groups=dim) weight (dim,1,K,K) stored as (K,K,dim)
        "w_dw": jax.random.normal(ks[0], (kernel_size, kernel_size, dim), jnp.float32) * 0.05,
        "b_dw": jax.random.normal(ks[1], (dim,), jnp.float32) * 0.05,
        # LayerNorm init per module __init__: weight=1, bias=0
        "ln_w": jnp.ones((dim,), jnp.float32),
        "ln_b": jnp.zeros((dim,), jnp.float32),
        # nn.Linear weights stored transposed (in, out)
        "w1": jax.random.normal(ks[2], (dim, hidden), jnp.float32) * 0.05,
        "b1": jax.random.normal(ks[3], (hidden,), jnp.float32) * 0.05,
        "w2": jax.random.normal(ks[4], (hidden, out_dim), jnp.float32) * 0.05,
        "b2": jax.random.normal(ks[5], (out_dim,), jnp.float32) * 0.05,
        "gamma": layer_scale_init_value * jnp.ones((out_dim,), jnp.float32),
    }


if __name__ == "__main__":
    # Small shapes: batch=2, dim=out_dim=32, spatial=8x8, expand_factor=2.
    # gamma init = 1.0 so the MLP branch meaningfully affects the output.
    N, C, H, W = 2, 32, 8, 8
    key = jax.random.PRNGKey(0)
    kx, kp = jax.random.split(key)
    x = jax.random.normal(kx, (N, C, H, W), jnp.float32)
    params = make_params(kp, dim=C, out_dim=C, layer_scale_init_value=1.0)

    ref = _reference(x, params)

    # Default fast path: bf16 MXU operands (f32 accumulate) + tanh GELU.
    out = jax.block_until_ready(convnext_block(x, params))
    assert out.shape == (N, C, H, W)
    err = jnp.max(jnp.abs(out - ref))
    assert jnp.allclose(out, ref, atol=3e-2, rtol=3e-2), \
        f"fast-path max abs err {err}"

    # Precise path (f32 MXU operands, exact-erf GELU like nn.GELU()),
    # also exercises a multi-step row-tile grid (nH = 2).
    out_exact = jax.block_until_ready(
        convnext_block(x, params, row_tile=4,
                       use_bf16_matmul=False, approx_gelu=False))
    err_exact = jnp.max(jnp.abs(out_exact - ref))
    assert jnp.allclose(out_exact, ref, atol=1e-2, rtol=1e-2), \
        f"precise-path max abs err {err_exact}"

    print("KERNEL_OK")
</pallas_src>

<mosaic_0001>
module attributes {stable_mosaic.version = 11 : i64} {
  func.func @_block_kernel(%arg0: i32, %arg1: i32, %arg2: memref<1x14x14x128xf32, #tpu.memory_space<vmem>>, %arg3: memref<1x64x128xf32, #tpu.memory_space<vmem>>, %arg4: memref<7x7x128xf32, #tpu.memory_space<vmem>>, %arg5: memref<1x128xf32, #tpu.memory_space<vmem>>, %arg6: memref<1x128xf32, #tpu.memory_space<vmem>>, %arg7: memref<1x128xf32, #tpu.memory_space<vmem>>, %arg8: memref<128x128xbf16, #tpu.memory_space<vmem>>, %arg9: memref<1x128xf32, #tpu.memory_space<vmem>>, %arg10: memref<128x128xbf16, #tpu.memory_space<vmem>>, %arg11: memref<1x128xf32, #tpu.memory_space<vmem>>, %arg12: memref<1x128xf32, #tpu.memory_space<vmem>>, %arg13: memref<1x64x128xf32, #tpu.memory_space<vmem>>, %arg14: memref<64x128xbf16, #tpu.memory_space<vmem>>) attributes {dimension_semantics = [#tpu.dimension_semantics<parallel>, #tpu.dimension_semantics<arbitrary>], iteration_bounds = array<i64: 2, 1>, scalar_prefetch = 0 : i64, scratch_operands = 1 : i64, tpu.core_type = #tpu.core_type<tc>, window_params = [{transform_indices = @transform_0, window_bounds = array<i64: 1, 14, 14, 128>}, {transform_indices = @transform_1, window_bounds = array<i64: 1, 64, 128>}, {pipeline_mode = #tpu.pipeline_mode<synchronous>, transform_indices = @transform_2, window_bounds = array<i64: 7, 7, 128>}, {pipeline_mode = #tpu.pipeline_mode<synchronous>, transform_indices = @transform_3, window_bounds = array<i64: 1, 128>}, {pipeline_mode = #tpu.pipeline_mode<synchronous>, transform_indices = @transform_4, window_bounds = array<i64: 1, 128>}, {pipeline_mode = #tpu.pipeline_mode<synchronous>, transform_indices = @transform_5, window_bounds = array<i64: 1, 128>}, {pipeline_mode = #tpu.pipeline_mode<synchronous>, transform_indices = @transform_6, window_bounds = array<i64: 128, 128>}, {pipeline_mode = #tpu.pipeline_mode<synchronous>, transform_indices = @transform_7, window_bounds = array<i64: 1, 128>}, {pipeline_mode = #tpu.pipeline_mode<synchronous>, transform_indices = @transform_8, window_bounds = array<i64: 128, 128>}, {pipeline_mode = #tpu.pipeline_mode<synchronous>, transform_indices = @transform_9, window_bounds = array<i64: 1, 128>}, {pipeline_mode = #tpu.pipeline_mode<synchronous>, transform_indices = @transform_10, window_bounds = array<i64: 1, 128>}, {transform_indices = @transform_11, window_bounds = array<i64: 1, 64, 128>}]} {
    %c8_i32 = arith.constant 8 : i32
    %0 = arith.muli %arg1, %c8_i32 : i32
    %1 = tpu.assume_multiple %0, 8 : i32
    %c0 = arith.constant 0 : index
    %c0_0 = arith.constant 0 : index
    %c0_1 = arith.constant 0 : index
    %2 = vector.load %arg4[%c0, %c0_0, %c0_1] : memref<7x7x128xf32, #tpu.memory_space<vmem>>, vector<7x7x128xf32>
    %c0_2 = arith.constant 0 : index
    %c0_3 = arith.constant 0 : index
    %3 = vector.load %arg5[%c0_2, %c0_3] : memref<1x128xf32, #tpu.memory_space<vmem>>, vector<1x128xf32>
    %4 = vector.shape_cast %3 : vector<1x128xf32> to vector<128xf32>
    %c0_4 = arith.constant 0 : index
    %c0_5 = arith.constant 0 : index
    %5 = vector.load %arg6[%c0_4, %c0_5] : memref<1x128xf32, #tpu.memory_space<vmem>>, vector<1x128xf32>
    %6 = vector.shape_cast %5 : vector<1x128xf32> to vector<128xf32>
    %c0_6 = arith.constant 0 : index
    %c0_7 = arith.constant 0 : index
    %7 = vector.load %arg7[%c0_6, %c0_7] : memref<1x128xf32, #tpu.memory_space<vmem>>, vector<1x128xf32>
    %8 = vector.shape_cast %7 : vector<1x128xf32> to vector<128xf32>
    %c0_i32 = arith.constant 0 : i32
    %c8_i32_8 = arith.constant 8 : i32
    %9 = arith.addi %c0_i32, %c8_i32_8 : i32
    %c1_i32 = arith.constant 1 : i32
    scf.for %arg15 = %c0_i32 to %9 step %c1_i32  : i32 {
      %50 = arith.addi %1, %arg15 : i32
      %cst_33 = arith.constant 0.000000e+00 : f32
      %51 = vector.broadcast %cst_33 : f32 to vector<1x8x128xf32>
      %c0_i32_34 = arith.constant 0 : i32
      %52 = arith.addi %50, %c0_i32_34 : i32
      %c0_35 = arith.constant 0 : index
      %53 = arith.index_cast %52 : i32 to index
      %c0_36 = arith.constant 0 : index
      %c0_37 = arith.constant 0 : index
      %54 = vector.load %arg2[%c0_35, %53, %c0_36, %c0_37] : memref<1x14x14x128xf32, #tpu.memory_space<vmem>>, vector<1x1x14x128xf32>
      %55 = vector.shape_cast %54 : vector<1x1x14x128xf32> to vector<1x14x128xf32>
      %56 = vector.extract_strided_slice %55 {offsets = [0, 0, 0], sizes = [1, 8, 128], strides = [1, 1, 1]} : vector<1x14x128xf32> to vector<1x8x128xf32>
      %57 = vector.extract_strided_slice %2 {offsets = [0, 0, 0], sizes = [1, 1, 128], strides = [1, 1, 1]} : vector<7x7x128xf32> to vector<1x1x128xf32>
      %58 = vector.shape_cast %57 : vector<1x1x128xf32> to vector<128xf32>
      %59 = vector.shape_cast %58 : vector<128xf32> to vector<1x1x128xf32>
      %60 = vector.broadcast %59 : vector<1x1x128xf32> to vector<1x8x128xf32>
      %61 = arith.mulf %56, %60 : vector<1x8x128xf32>
      %62 = arith.addf %51, %61 : vector<1x8x128xf32>
      %63 = vector.extract_strided_slice %55 {offsets = [0, 1, 0], sizes = [1, 8, 128], strides = [1, 1, 1]} : vector<1x14x128xf32> to vector<1x8x128xf32>
      %64 = vector.extract_strided_slice %2 {offsets = [0, 1, 0], sizes = [1, 1, 128], strides = [1, 1, 1]} : vector<7x7x128xf32> to vector<1x1x128xf32>
      %65 = vector.shape_cast %64 : vector<1x1x128xf32> to vector<128xf32>
      %66 = vector.shape_cast %65 : vector<128xf32> to vector<1x1x128xf32>
      %67 = vector.broadcast %66 : vector<1x1x128xf32> to vector<1x8x128xf32>
      %68 = arith.mulf %63, %67 : vector<1x8x128xf32>
      %69 = arith.addf %62, %68 : vector<1x8x128xf32>
      %70 = vector.extract_strided_slice %55 {offsets = [0, 2, 0], sizes = [1, 8, 128], strides = [1, 1, 1]} : vector<1x14x128xf32> to vector<1x8x128xf32>
      %71 = vector.extract_strided_slice %2 {offsets = [0, 2, 0], sizes = [1, 1, 128], strides = [1, 1, 1]} : vector<7x7x128xf32> to vector<1x1x128xf32>
      %72 = vector.shape_cast %71 : vector<1x1x128xf32> to vector<128xf32>
      %73 = vector.shape_cast %72 : vector<128xf32> to vector<1x1x128xf32>
      %74 = vector.broadcast %73 : vector<1x1x128xf32> to vector<1x8x128xf32>
      %75 = arith.mulf %70, %74 : vector<1x8x128xf32>
      %76 = arith.addf %69, %75 : vector<1x8x128xf32>
      %77 = vector.extract_strided_slice %55 {offsets = [0, 3, 0], sizes = [1, 8, 128], strides = [1, 1, 1]} : vector<1x14x128xf32> to vector<1x8x128xf32>
      %78 = vector.extract_strided_slice %2 {offsets = [0, 3, 0], sizes = [1, 1, 128], strides = [1, 1, 1]} : vector<7x7x128xf32> to vector<1x1x128xf32>
      %79 = vector.shape_cast %78 : vector<1x1x128xf32> to vector<128xf32>
      %80 = vector.shape_cast %79 : vector<128xf32> to vector<1x1x128xf32>
      %81 = vector.broadcast %80 : vector<1x1x128xf32> to vector<1x8x128xf32>
      %82 = arith.mulf %77, %81 : vector<1x8x128xf32>
      %83 = arith.addf %76, %82 : vector<1x8x128xf32>
      %84 = vector.extract_strided_slice %55 {offsets = [0, 4, 0], sizes = [1, 8, 128], strides = [1, 1, 1]} : vector<1x14x128xf32> to vector<1x8x128xf32>
      %85 = vector.extract_strided_slice %2 {offsets = [0, 4, 0], sizes = [1, 1, 128], strides = [1, 1, 1]} : vector<7x7x128xf32> to vector<1x1x128xf32>
      %86 = vector.shape_cast %85 : vector<1x1x128xf32> to vector<128xf32>
      %87 = vector.shape_cast %86 : vector<128xf32> to vector<1x1x128xf32>
      %88 = vector.broadcast %87 : vector<1x1x128xf32> to vector<1x8x128xf32>
      %89 = arith.mulf %84, %88 : vector<1x8x128xf32>
      %90 = arith.addf %83, %89 : vector<1x8x128xf32>
      %91 = vector.extract_strided_slice %55 {offsets = [0, 5, 0], sizes = [1, 8, 128], strides = [1, 1, 1]} : vector<1x14x128xf32> to vector<1x8x128xf32>
      %92 = vector.extract_strided_slice %2 {offsets = [0, 5, 0], sizes = [1, 1, 128], strides = [1, 1, 1]} : vector<7x7x128xf32> to vector<1x1x128xf32>
      %93 = vector.shape_cast %92 : vector<1x1x128xf32> to vector<128xf32>
      %94 = vector.shape_cast %93 : vector<128xf32> to vector<1x1x128xf32>
      %95 = vector.broadcast %94 : vector<1x1x128xf32> to vector<1x8x128xf32>
      %96 = arith.mulf %91, %95 : vector<1x8x128xf32>
      %97 = arith.addf %90, %96 : vector<1x8x128xf32>
      %98 = vector.extract_strided_slice %55 {offsets = [0, 6, 0], sizes = [1, 8, 128], strides = [1, 1, 1]} : vector<1x14x128xf32> to vector<1x8x128xf32>
      %99 = vector.extract_strided_slice %2 {offsets = [0, 6, 0], sizes = [1, 1, 128], strides = [1, 1, 1]} : vector<7x7x128xf32> to vector<1x1x128xf32>
      %100 = vector.shape_cast %99 : vector<1x1x128xf32> to vector<128xf32>
      %101 = vector.shape_cast %100 : vector<128xf32> to vector<1x1x128xf32>
      %102 = vector.broadcast %101 : vector<1x1x128xf32> to vector<1x8x128xf32>
      %103 = arith.mulf %98, %102 : vector<1x8x128xf32>
      %104 = arith.addf %97, %103 : vector<1x8x128xf32>
      %c1_i32_38 = arith.constant 1 : i32
      %105 = arith.addi %50, %c1_i32_38 : i32
      %c0_39 = arith.constant 0 : index
      %106 = arith.index_cast %105 : i32 to index
      %c0_40 = arith.constant 0 : index
      %c0_41 = arith.constant 0 : index
      %107 = vector.load %arg2[%c0_39, %106, %c0_40, %c0_41] : memref<1x14x14x128xf32, #tpu.memory_space<vmem>>, vector<1x1x14x128xf32>
      %108 = vector.shape_cast %107 : vector<1x1x14x128xf32> to vector<1x14x128xf32>
      %109 = vector.extract_strided_slice %108 {offsets = [0, 0, 0], sizes = [1, 8, 128], strides = [1, 1, 1]} : vector<1x14x128xf32> to vector<1x8x128xf32>
      %110 = vector.extract_strided_slice %2 {offsets = [1, 0, 0], sizes = [1, 1, 128], strides = [1, 1, 1]} : vector<7x7x128xf32> to vector<1x1x128xf32>
      %111 = vector.shape_cast %110 : vector<1x1x128xf32> to vector<128xf32>
      %112 = vector.shape_cast %111 : vector<128xf32> to vector<1x1x128xf32>
      %113 = vector.broadcast %112 : vector<1x1x128xf32> to vector<1x8x128xf32>
      %114 = arith.mulf %109, %113 : vector<1x8x128xf32>
      %115 = arith.addf %104, %114 : vector<1x8x128xf32>
      %116 = vector.extract_strided_slice %108 {offsets = [0, 1, 0], sizes = [1, 8, 128], strides = [1, 1, 1]} : vector<1x14x128xf32> to vector<1x8x128xf32>
      %117 = vector.extract_strided_slice %2 {offsets = [1, 1, 0], sizes = [1, 1, 128], strides = [1, 1, 1]} : vector<7x7x128xf32> to vector<1x1x128xf32>
      %118 = vector.shape_cast %117 : vector<1x1x128xf32> to vector<128xf32>
      %119 = vector.shape_cast %118 : vector<128xf32> to vector<1x1x128xf32>
      %120 = vector.broadcast %119 : vector<1x1x128xf32> to vector<1x8x128xf32>
      %121 = arith.mulf %116, %120 : vector<1x8x128xf32>
      %122 = arith.addf %115, %121 : vector<1x8x128xf32>
      %123 = vector.extract_strided_slice %108 {offsets = [0, 2, 0], sizes = [1, 8, 128], strides = [1, 1, 1]} : vector<1x14x128xf32> to vector<1x8x128xf32>
      %124 = vector.extract_strided_slice %2 {offsets = [1, 2, 0], sizes = [1, 1, 128], strides = [1, 1, 1]} : vector<7x7x128xf32> to vector<1x1x128xf32>
      %125 = vector.shape_cast %124 : vector<1x1x128xf32> to vector<128xf32>
      %126 = vector.shape_cast %125 : vector<128xf32> to vector<1x1x128xf32>
      %127 = vector.broadcast %126 : vector<1x1x128xf32> to vector<1x8x128xf32>
      %128 = arith.mulf %123, %127 : vector<1x8x128xf32>
      %129 = arith.addf %122, %128 : vector<1x8x128xf32>
      %130 = vector.extract_strided_slice %108 {offsets = [0, 3, 0], sizes = [1, 8, 128], strides = [1, 1, 1]} : vector<1x14x128xf32> to vector<1x8x128xf32>
      %131 = vector.extract_strided_slice %2 {offsets = [1, 3, 0], sizes = [1, 1, 128], strides = [1, 1, 1]} : vector<7x7x128xf32> to vector<1x1x128xf32>
      %132 = vector.shape_cast %131 : vector<1x1x128xf32> to vector<128xf32>
      %133 = vector.shape_cast %132 : vector<128xf32> to vector<1x1x128xf32>
      %134 = vector.broadcast %133 : vector<1x1x128xf32> to vector<1x8x128xf32>
      %135 = arith.mulf %130, %134 : vector<1x8x128xf32>
      %136 = arith.addf %129, %135 : vector<1x8x128xf32>
      %137 = vector.extract_strided_slice %108 {offsets = [0, 4, 0], sizes = [1, 8, 128], strides = [1, 1, 1]} : vector<1x14x128xf32> to vector<1x8x128xf32>
      %138 = vector.extract_strided_slice %2 {offsets = [1, 4, 0], sizes = [1, 1, 128], strides = [1, 1, 1]} : vector<7x7x128xf32> to vector<1x1x128xf32>
      %139 = vector.shape_cast %138 : vector<1x1x128xf32> to vector<128xf32>
      %140 = vector.shape_cast %139 : vector<128xf32> to vector<1x1x128xf32>
      %141 = vector.broadcast %140 : vector<1x1x128xf32> to vector<1x8x128xf32>
      %142 = arith.mulf %137, %141 : vector<1x8x128xf32>
      %143 = arith.addf %136, %142 : vector<1x8x128xf32>
      %144 = vector.extract_strided_slice %108 {offsets = [0, 5, 0], sizes = [1, 8, 128], strides = [1, 1, 1]} : vector<1x14x128xf32> to vector<1x8x128xf32>
      %145 = vector.extract_strided_slice %2 {offsets = [1, 5, 0], sizes = [1, 1, 128], strides = [1, 1, 1]} : vector<7x7x128xf32> to vector<1x1x128xf32>
      %146 = vector.shape_cast %145 : vector<1x1x128xf32> to vector<128xf32>
      %147 = vector.shape_cast %146 : vector<128xf32> to vector<1x1x128xf32>
      %148 = vector.broadcast %147 : vector<1x1x128xf32> to vector<1x8x128xf32>
      %149 = arith.mulf %144, %148 : vector<1x8x128xf32>
      %150 = arith.addf %143, %149 : vector<1x8x128xf32>
      %151 = vector.extract_strided_slice %108 {offsets = [0, 6, 0], sizes = [1, 8, 128], strides = [1, 1, 1]} : vector<1x14x128xf32> to vector<1x8x128xf32>
      %152 = vector.extract_strided_slice %2 {offsets = [1, 6, 0], sizes = [1, 1, 128], strides = [1, 1, 1]} : vector<7x7x128xf32> to vector<1x1x128xf32>
      %153 = vector.shape_cast %152 : vector<1x1x128xf32> to vector<128xf32>
      %154 = vector.shape_cast %153 : vector<128xf32> to vector<1x1x128xf32>
      %155 = vector.broadcast %154 : vector<1x1x128xf32> to vector<1x8x128xf32>
      %156 = arith.mulf %151, %155 : vector<1x8x128xf32>
      %157 = arith.addf %150, %156 : vector<1x8x128xf32>
      %c2_i32 = arith.constant 2 : i32
      %158 = arith.addi %50, %c2_i32 : i32
      %c0_42 = arith.constant 0 : index
      %159 = arith.index_cast %158 : i32 to index
      %c0_43 = arith.constant 0 : index
      %c0_44 = arith.constant 0 : index
      %160 = vector.load %arg2[%c0_42, %159, %c0_43, %c0_44] : memref<1x14x14x128xf32, #tpu.memory_space<vmem>>, vector<1x1x14x128xf32>
      %161 = vector.shape_cast %160 : vector<1x1x14x128xf32> to vector<1x14x128xf32>
      %162 = vector.extract_strided_slice %161 {offsets = [0, 0, 0], sizes = [1, 8, 128], strides = [1, 1, 1]} : vector<1x14x128xf32> to vector<1x8x128xf32>
      %163 = vector.extract_strided_slice %2 {offsets = [2, 0, 0], sizes = [1, 1, 128], strides = [1, 1, 1]} : vector<7x7x128xf32> to vector<1x1x128xf32>
      %164 = vector.shape_cast %163 : vector<1x1x128xf32> to vector<128xf32>
      %165 = vector.shape_cast %164 : vector<128xf32> to vector<1x1x128xf32>
      %166 = vector.broadcast %165 : vector<1x1x128xf32> to vector<1x8x128xf32>
      %167 = arith.mulf %162, %166 : vector<1x8x128xf32>
      %168 = arith.addf %157, %167 : vector<1x8x128xf32>
      %169 = vector.extract_strided_slice %161 {offsets = [0, 1, 0], sizes = [1, 8, 128], strides = [1, 1, 1]} : vector<1x14x128xf32> to vector<1x8x128xf32>
      %170 = vector.extract_strided_slice %2 {offsets = [2, 1, 0], sizes = [1, 1, 128], strides = [1, 1, 1]} : vector<7x7x128xf32> to vector<1x1x128xf32>
      %171 = vector.shape_cast %170 : vector<1x1x128xf32> to vector<128xf32>
      %172 = vector.shape_cast %171 : vector<128xf32> to vector<1x1x128xf32>
      %173 = vector.broadcast %172 : vector<1x1x128xf32> to vector<1x8x128xf32>
      %174 = arith.mulf %169, %173 : vector<1x8x128xf32>
      %175 = arith.addf %168, %174 : vector<1x8x128xf32>
      %176 = vector.extract_strided_slice %161 {offsets = [0, 2, 0], sizes = [1, 8, 128], strides = [1, 1, 1]} : vector<1x14x128xf32> to vector<1x8x128xf32>
      %177 = vector.extract_strided_slice %2 {offsets = [2, 2, 0], sizes = [1, 1, 128], strides = [1, 1, 1]} : vector<7x7x128xf32> to vector<1x1x128xf32>
      %178 = vector.shape_cast %177 : vector<1x1x128xf32> to vector<128xf32>
      %179 = vector.shape_cast %178 : vector<128xf32> to vector<1x1x128xf32>
      %180 = vector.broadcast %179 : vector<1x1x128xf32> to vector<1x8x128xf32>
      %181 = arith.mulf %176, %180 : vector<1x8x128xf32>
      %182 = arith.addf %175, %181 : vector<1x8x128xf32>
      %183 = vector.extract_strided_slice %161 {offsets = [0, 3, 0], sizes = [1, 8, 128], strides = [1, 1, 1]} : vector<1x14x128xf32> to vector<1x8x128xf32>
      %184 = vector.extract_strided_slice %2 {offsets = [2, 3, 0], sizes = [1, 1, 128], strides = [1, 1, 1]} : vector<7x7x128xf32> to vector<1x1x128xf32>
      %185 = vector.shape_cast %184 : vector<1x1x128xf32> to vector<128xf32>
      %186 = vector.shape_cast %185 : vector<128xf32> to vector<1x1x128xf32>
      %187 = vector.broadcast %186 : vector<1x1x128xf32> to vector<1x8x128xf32>
      %188 = arith.mulf %183, %187 : vector<1x8x128xf32>
      %189 = arith.addf %182, %188 : vector<1x8x128xf32>
      %190 = vector.extract_strided_slice %161 {offsets = [0, 4, 0], sizes = [1, 8, 128], strides = [1, 1, 1]} : vector<1x14x128xf32> to vector<1x8x128xf32>
      %191 = vector.extract_strided_slice %2 {offsets = [2, 4, 0], sizes = [1, 1, 128], strides = [1, 1, 1]} : vector<7x7x128xf32> to vector<1x1x128xf32>
      %192 = vector.shape_cast %191 : vector<1x1x128xf32> to vector<128xf32>
      %193 = vector.shape_cast %192 : vector<128xf32> to vector<1x1x128xf32>
      %194 = vector.broadcast %193 : vector<1x1x128xf32> to vector<1x8x128xf32>
      %195 = arith.mulf %190, %194 : vector<1x8x128xf32>
      %196 = arith.addf %189, %195 : vector<1x8x128xf32>
      %197 = vector.extract_strided_slice %161 {offsets = [0, 5, 0], sizes = [1, 8, 128], strides = [1, 1, 1]} : vector<1x14x128xf32> to vector<1x8x128xf32>
      %198 = vector.extract_strided_slice %2 {offsets = [2, 5, 0], sizes = [1, 1, 128], strides = [1, 1, 1]} : vector<7x7x128xf32> to vector<1x1x128xf32>
      %199 = vector.shape_cast %198 : vector<1x1x128xf32> to vector<128xf32>
      %200 = vector.shape_cast %199 : vector<128xf32> to vector<1x1x128xf32>
      %201 = vector.broadcast %200 : vector<1x1x128xf32> to vector<1x8x128xf32>
      %202 = arith.mulf %197, %201 : vector<1x8x128xf32>
      %203 = arith.addf %196, %202 : vector<1x8x128xf32>
      %204 = vector.extract_strided_slice %161 {offsets = [0, 6, 0], sizes = [1, 8, 128], strides = [1, 1, 1]} : vector<1x14x128xf32> to vector<1x8x128xf32>
      %205 = vector.extract_strided_slice %2 {offsets = [2, 6, 0], sizes = [1, 1, 128], strides = [1, 1, 1]} : vector<7x7x128xf32> to vector<1x1x128xf32>
      %206 = vector.shape_cast %205 : vector<1x1x128xf32> to vector<128xf32>
      %207 = vector.shape_cast %206 : vector<128xf32> to vector<1x1x128xf32>
      %208 = vector.broadcast %207 : vector<1x1x128xf32> to vector<1x8x128xf32>
      %209 = arith.mulf %204, %208 : vector<1x8x128xf32>
      %210 = arith.addf %203, %209 : vector<1x8x128xf32>
      %c3_i32 = arith.constant 3 : i32
      %211 = arith.addi %50, %c3_i32 : i32
      %c0_45 = arith.constant 0 : index
      %212 = arith.index_cast %211 : i32 to index
      %c0_46 = arith.constant 0 : index
      %c0_47 = arith.constant 0 : index
      %213 = vector.load %arg2[%c0_45, %212, %c0_46, %c0_47] : memref<1x14x14x128xf32, #tpu.memory_space<vmem>>, vector<1x1x14x128xf32>
      %214 = vector.shape_cast %213 : vector<1x1x14x128xf32> to vector<1x14x128xf32>
      %215 = vector.extract_strided_slice %214 {offsets = [0, 0, 0], sizes = [1, 8, 128], strides = [1, 1, 1]} : vector<1x14x128xf32> to vector<1x8x128xf32>
      %216 = vector.extract_strided_slice %2 {offsets = [3, 0, 0], sizes = [1, 1, 128], strides = [1, 1, 1]} : vector<7x7x128xf32> to vector<1x1x128xf32>
      %217 = vector.shape_cast %216 : vector<1x1x128xf32> to vector<128xf32>
      %218 = vector.shape_cast %217 : vector<128xf32> to vector<1x1x128xf32>
      %219 = vector.broadcast %218 : vector<1x1x128xf32> to vector<1x8x128xf32>
      %220 = arith.mulf %215, %219 : vector<1x8x128xf32>
      %221 = arith.addf %210, %220 : vector<1x8x128xf32>
      %222 = vector.extract_strided_slice %214 {offsets = [0, 1, 0], sizes = [1, 8, 128], strides = [1, 1, 1]} : vector<1x14x128xf32> to vector<1x8x128xf32>
      %223 = vector.extract_strided_slice %2 {offsets = [3, 1, 0], sizes = [1, 1, 128], strides = [1, 1, 1]} : vector<7x7x128xf32> to vector<1x1x128xf32>
      %224 = vector.shape_cast %223 : vector<1x1x128xf32> to vector<128xf32>
      %225 = vector.shape_cast %224 : vector<128xf32> to vector<1x1x128xf32>
      %226 = vector.broadcast %225 : vector<1x1x128xf32> to vector<1x8x128xf32>
      %227 = arith.mulf %222, %226 : vector<1x8x128xf32>
      %228 = arith.addf %221, %227 : vector<1x8x128xf32>
      %229 = vector.extract_strided_slice %214 {offsets = [0, 2, 0], sizes = [1, 8, 128], strides = [1, 1, 1]} : vector<1x14x128xf32> to vector<1x8x128xf32>
      %230 = vector.extract_strided_slice %2 {offsets = [3, 2, 0], sizes = [1, 1, 128], strides = [1, 1, 1]} : vector<7x7x128xf32> to vector<1x1x128xf32>
      %231 = vector.shape_cast %230 : vector<1x1x128xf32> to vector<128xf32>
      %232 = vector.shape_cast %231 : vector<128xf32> to vector<1x1x128xf32>
      %233 = vector.broadcast %232 : vector<1x1x128xf32> to vector<1x8x128xf32>
      %234 = arith.mulf %229, %233 : vector<1x8x128xf32>
      %235 = arith.addf %228, %234 : vector<1x8x128xf32>
      %236 = vector.extract_strided_slice %214 {offsets = [0, 3, 0], sizes = [1, 8, 128], strides = [1, 1, 1]} : vector<1x14x128xf32> to vector<1x8x128xf32>
      %237 = vector.extract_strided_slice %2 {offsets = [3, 3, 0], sizes = [1, 1, 128], strides = [1, 1, 1]} : vector<7x7x128xf32> to vector<1x1x128xf32>
      %238 = vector.shape_cast %237 : vector<1x1x128xf32> to vector<128xf32>
      %239 = vector.shape_cast %238 : vector<128xf32> to vector<1x1x128xf32>
      %240 = vector.broadcast %239 : vector<1x1x128xf32> to vector<1x8x128xf32>
      %241 = arith.mulf %236, %240 : vector<1x8x128xf32>
      %242 = arith.addf %235, %241 : vector<1x8x128xf32>
      %243 = vector.extract_strided_slice %214 {offsets = [0, 4, 0], sizes = [1, 8, 128], strides = [1, 1, 1]} : vector<1x14x128xf32> to vector<1x8x128xf32>
      %244 = vector.extract_strided_slice %2 {offsets = [3, 4, 0], sizes = [1, 1, 128], strides = [1, 1, 1]} : vector<7x7x128xf32> to vector<1x1x128xf32>
      %245 = vector.shape_cast %244 : vector<1x1x128xf32> to vector<128xf32>
      %246 = vector.shape_cast %245 : vector<128xf32> to vector<1x1x128xf32>
      %247 = vector.broadcast %246 : vector<1x1x128xf32> to vector<1x8x128xf32>
      %248 = arith.mulf %243, %247 : vector<1x8x128xf32>
      %249 = arith.addf %242, %248 : vector<1x8x128xf32>
      %250 = vector.extract_strided_slice %214 {offsets = [0, 5, 0], sizes = [1, 8, 128], strides = [1, 1, 1]} : vector<1x14x128xf32> to vector<1x8x128xf32>
      %251 = vector.extract_strided_slice %2 {offsets = [3, 5, 0], sizes = [1, 1, 128], strides = [1, 1, 1]} : vector<7x7x128xf32> to vector<1x1x128xf32>
      %252 = vector.shape_cast %251 : vector<1x1x128xf32> to vector<128xf32>
      %253 = vector.shape_cast %252 : vector<128xf32> to vector<1x1x128xf32>
      %254 = vector.broadcast %253 : vector<1x1x128xf32> to vector<1x8x128xf32>
      %255 = arith.mulf %250, %254 : vector<1x8x128xf32>
      %256 = arith.addf %249, %255 : vector<1x8x128xf32>
      %257 = vector.extract_strided_slice %214 {offsets = [0, 6, 0], sizes = [1, 8, 128], strides = [1, 1, 1]} : vector<1x14x128xf32> to vector<1x8x128xf32>
      %258 = vector.extract_strided_slice %2 {offsets = [3, 6, 0], sizes = [1, 1, 128], strides = [1, 1, 1]} : vector<7x7x128xf32> to vector<1x1x128xf32>
      %259 = vector.shape_cast %258 : vector<1x1x128xf32> to vector<128xf32>
      %260 = vector.shape_cast %259 : vector<128xf32> to vector<1x1x128xf32>
      %261 = vector.broadcast %260 : vector<1x1x128xf32> to vector<1x8x128xf32>
      %262 = arith.mulf %257, %261 : vector<1x8x128xf32>
      %263 = arith.addf %256, %262 : vector<1x8x128xf32>
      %c4_i32 = arith.constant 4 : i32
      %264 = arith.addi %50, %c4_i32 : i32
      %c0_48 = arith.constant 0 : index
      %265 = arith.index_cast %264 : i32 to index
      %c0_49 = arith.constant 0 : index
      %c0_50 = arith.constant 0 : index
      %266 = vector.load %arg2[%c0_48, %265, %c0_49, %c0_50] : memref<1x14x14x128xf32, #tpu.memory_space<vmem>>, vector<1x1x14x128xf32>
      %267 = vector.shape_cast %266 : vector<1x1x14x128xf32> to vector<1x14x128xf32>
      %268 = vector.extract_strided_slice %267 {offsets = [0, 0, 0], sizes = [1, 8, 128], strides = [1, 1, 1]} : vector<1x14x128xf32> to vector<1x8x128xf32>
      %269 = vector.extract_strided_slice %2 {offsets = [4, 0, 0], sizes = [1, 1, 128], strides = [1, 1, 1]} : vector<7x7x128xf32> to vector<1x1x128xf32>
      %270 = vector.shape_cast %269 : vector<1x1x128xf32> to vector<128xf32>
      %271 = vector.shape_cast %270 : vector<128xf32> to vector<1x1x128xf32>
      %272 = vector.broadcast %271 : vector<1x1x128xf32> to vector<1x8x128xf32>
      %273 = arith.mulf %268, %272 : vector<1x8x128xf32>
      %274 = arith.addf %263, %273 : vector<1x8x128xf32>
      %275 = vector.extract_strided_slice %267 {offsets = [0, 1, 0], sizes = [1, 8, 128], strides = [1, 1, 1]} : vector<1x14x128xf32> to vector<1x8x128xf32>
      %276 = vector.extract_strided_slice %2 {offsets = [4, 1, 0], sizes = [1, 1, 128], strides = [1, 1, 1]} : vector<7x7x128xf32> to vector<1x1x128xf32>
      %277 = vector.shape_cast %276 : vector<1x1x128xf32> to vector<128xf32>
      %278 = vector.shape_cast %277 : vector<128xf32> to vector<1x1x128xf32>
      %279 = vector.broadcast %278 : vector<1x1x128xf32> to vector<1x8x128xf32>
      %280 = arith.mulf %275, %279 : vector<1x8x128xf32>
      %281 = arith.addf %274, %280 : vector<1x8x128xf32>
      %282 = vector.extract_strided_slice %267 {offsets = [0, 2, 0], sizes = [1, 8, 128], strides = [1, 1, 1]} : vector<1x14x128xf32> to vector<1x8x128xf32>
      %283 = vector.extract_strided_slice %2 {offsets = [4, 2, 0], sizes = [1, 1, 128], strides = [1, 1, 1]} : vector<7x7x128xf32> to vector<1x1x128xf32>
      %284 = vector.shape_cast %283 : vector<1x1x128xf32> to vector<128xf32>
      %285 = vector.shape_cast %284 : vector<128xf32> to vector<1x1x128xf32>
      %286 = vector.broadcast %285 : vector<1x1x128xf32> to vector<1x8x128xf32>
      %287 = arith.mulf %282, %286 : vector<1x8x128xf32>
      %288 = arith.addf %281, %287 : vector<1x8x128xf32>
      %289 = vector.extract_strided_slice %267 {offsets = [0, 3, 0], sizes = [1, 8, 128], strides = [1, 1, 1]} : vector<1x14x128xf32> to vector<1x8x128xf32>
      %290 = vector.extract_strided_slice %2 {offsets = [4, 3, 0], sizes = [1, 1, 128], strides = [1, 1, 1]} : vector<7x7x128xf32> to vector<1x1x128xf32>
      %291 = vector.shape_cast %290 : vector<1x1x128xf32> to vector<128xf32>
      %292 = vector.shape_cast %291 : vector<128xf32> to vector<1x1x128xf32>
      %293 = vector.broadcast %292 : vector<1x1x128xf32> to vector<1x8x128xf32>
      %294 = arith.mulf %289, %293 : vector<1x8x128xf32>
      %295 = arith.addf %288, %294 : vector<1x8x128xf32>
      %296 = vector.extract_strided_slice %267 {offsets = [0, 4, 0], sizes = [1, 8, 128], strides = [1, 1, 1]} : vector<1x14x128xf32> to vector<1x8x128xf32>
      %297 = vector.extract_strided_slice %2 {offsets = [4, 4, 0], sizes = [1, 1, 128], strides = [1, 1, 1]} : vector<7x7x128xf32> to vector<1x1x128xf32>
      %298 = vector.shape_cast %297 : vector<1x1x128xf32> to vector<128xf32>
      %299 = vector.shape_cast %298 : vector<128xf32> to vector<1x1x128xf32>
      %300 = vector.broadcast %299 : vector<1x1x128xf32> to vector<1x8x128xf32>
      %301 = arith.mulf %296, %300 : vector<1x8x128xf32>
      %302 = arith.addf %295, %301 : vector<1x8x128xf32>
      %303 = vector.extract_strided_slice %267 {offsets = [0, 5, 0], sizes = [1, 8, 128], strides = [1, 1, 1]} : vector<1x14x128xf32> to vector<1x8x128xf32>
      %304 = vector.extract_strided_slice %2 {offsets = [4, 5, 0], sizes = [1, 1, 128], strides = [1, 1, 1]} : vector<7x7x128xf32> to vector<1x1x128xf32>
      %305 = vector.shape_cast %304 : vector<1x1x128xf32> to vector<128xf32>
      %306 = vector.shape_cast %305 : vector<128xf32> to vector<1x1x128xf32>
      %307 = vector.broadcast %306 : vector<1x1x128xf32> to vector<1x8x128xf32>
      %308 = arith.mulf %303, %307 : vector<1x8x128xf32>
      %309 = arith.addf %302, %308 : vector<1x8x128xf32>
      %310 = vector.extract_strided_slice %267 {offsets = [0, 6, 0], sizes = [1, 8, 128], strides = [1, 1, 1]} : vector<1x14x128xf32> to vector<1x8x128xf32>
      %311 = vector.extract_strided_slice %2 {offsets = [4, 6, 0], sizes = [1, 1, 128], strides = [1, 1, 1]} : vector<7x7x128xf32> to vector<1x1x128xf32>
      %312 = vector.shape_cast %311 : vector<1x1x128xf32> to vector<128xf32>
      %313 = vector.shape_cast %312 : vector<128xf32> to vector<1x1x128xf32>
      %314 = vector.broadcast %313 : vector<1x1x128xf32> to vector<1x8x128xf32>
      %315 = arith.mulf %310, %314 : vector<1x8x128xf32>
      %316 = arith.addf %309, %315 : vector<1x8x128xf32>
      %c5_i32 = arith.constant 5 : i32
      %317 = arith.addi %50, %c5_i32 : i32
      %c0_51 = arith.constant 0 : index
      %318 = arith.index_cast %317 : i32 to index
      %c0_52 = arith.constant 0 : index
      %c0_53 = arith.constant 0 : index
      %319 = vector.load %arg2[%c0_51, %318, %c0_52, %c0_53] : memref<1x14x14x128xf32, #tpu.memory_space<vmem>>, vector<1x1x14x128xf32>
      %320 = vector.shape_cast %319 : vector<1x1x14x128xf32> to vector<1x14x128xf32>
      %321 = vector.extract_strided_slice %320 {offsets = [0, 0, 0], sizes = [1, 8, 128], strides = [1, 1, 1]} : vector<1x14x128xf32> to vector<1x8x128xf32>
      %322 = vector.extract_strided_slice %2 {offsets = [5, 0, 0], sizes = [1, 1, 128], strides = [1, 1, 1]} : vector<7x7x128xf32> to vector<1x1x128xf32>
      %323 = vector.shape_cast %322 : vector<1x1x128xf32> to vector<128xf32>
      %324 = vector.shape_cast %323 : vector<128xf32> to vector<1x1x128xf32>
      %325 = vector.broadcast %324 : vector<1x1x128xf32> to vector<1x8x128xf32>
      %326 = arith.mulf %321, %325 : vector<1x8x128xf32>
      %327 = arith.addf %316, %326 : vector<1x8x128xf32>
      %328 = vector.extract_strided_slice %320 {offsets = [0, 1, 0], sizes = [1, 8, 128], strides = [1, 1, 1]} : vector<1x14x128xf32> to vector<1x8x128xf32>
      %329 = vector.extract_strided_slice %2 {offsets = [5, 1, 0], sizes = [1, 1, 128], strides = [1, 1, 1]} : vector<7x7x128xf32> to vector<1x1x128xf32>
      %330 = vector.shape_cast %329 : vector<1x1x128xf32> to vector<128xf32>
      %331 = vector.shape_cast %330 : vector<128xf32> to vector<1x1x128xf32>
      %332 = vector.broadcast %331 : vector<1x1x128xf32> to vector<1x8x128xf32>
      %333 = arith.mulf %328, %332 : vector<1x8x128xf32>
      %334 = arith.addf %327, %333 : vector<1x8x128xf32>
      %335 = vector.extract_strided_slice %320 {offsets = [0, 2, 0], sizes = [1, 8, 128], strides = [1, 1, 1]} : vector<1x14x128xf32> to vector<1x8x128xf32>
      %336 = vector.extract_strided_slice %2 {offsets = [5, 2, 0], sizes = [1, 1, 128], strides = [1, 1, 1]} : vector<7x7x128xf32> to vector<1x1x128xf32>
      %337 = vector.shape_cast %336 : vector<1x1x128xf32> to vector<128xf32>
      %338 = vector.shape_cast %337 : vector<128xf32> to vector<1x1x128xf32>
      %339 = vector.broadcast %338 : vector<1x1x128xf32> to vector<1x8x128xf32>
      %340 = arith.mulf %335, %339 : vector<1x8x128xf32>
      %341 = arith.addf %334, %340 : vector<1x8x128xf32>
      %342 = vector.extract_strided_slice %320 {offsets = [0, 3, 0], sizes = [1, 8, 128], strides = [1, 1, 1]} : vector<1x14x128xf32> to vector<1x8x128xf32>
      %343 = vector.extract_strided_slice %2 {offsets = [5, 3, 0], sizes = [1, 1, 128], strides = [1, 1, 1]} : vector<7x7x128xf32> to vector<1x1x128xf32>
      %344 = vector.shape_cast %343 : vector<1x1x128xf32> to vector<128xf32>
      %345 = vector.shape_cast %344 : vector<128xf32> to vector<1x1x128xf32>
      %346 = vector.broadcast %345 : vector<1x1x128xf32> to vector<1x8x128xf32>
      %347 = arith.mulf %342, %346 : vector<1x8x128xf32>
      %348 = arith.addf %341, %347 : vector<1x8x128xf32>
      %349 = vector.extract_strided_slice %320 {offsets = [0, 4, 0], sizes = [1, 8, 128], strides = [1, 1, 1]} : vector<1x14x128xf32> to vector<1x8x128xf32>
      %350 = vector.extract_strided_slice %2 {offsets = [5, 4, 0], sizes = [1, 1, 128], strides = [1, 1, 1]} : vector<7x7x128xf32> to vector<1x1x128xf32>
      %351 = vector.shape_cast %350 : vector<1x1x128xf32> to vector<128xf32>
      %352 = vector.shape_cast %351 : vector<128xf32> to vector<1x1x128xf32>
      %353 = vector.broadcast %352 : vector<1x1x128xf32> to vector<1x8x128xf32>
      %354 = arith.mulf %349, %353 : vector<1x8x128xf32>
      %355 = arith.addf %348, %354 : vector<1x8x128xf32>
      %356 = vector.extract_strided_slice %320 {offsets = [0, 5, 0], sizes = [1, 8, 128], strides = [1, 1, 1]} : vector<1x14x128xf32> to vector<1x8x128xf32>
      %357 = vector.extract_strided_slice %2 {offsets = [5, 5, 0], sizes = [1, 1, 128], strides = [1, 1, 1]} : vector<7x7x128xf32> to vector<1x1x128xf32>
      %358 = vector.shape_cast %357 : vector<1x1x128xf32> to vector<128xf32>
      %359 = vector.shape_cast %358 : vector<128xf32> to vector<1x1x128xf32>
      %360 = vector.broadcast %359 : vector<1x1x128xf32> to vector<1x8x128xf32>
      %361 = arith.mulf %356, %360 : vector<1x8x128xf32>
      %362 = arith.addf %355, %361 : vector<1x8x128xf32>
      %363 = vector.extract_strided_slice %320 {offsets = [0, 6, 0], sizes = [1, 8, 128], strides = [1, 1, 1]} : vector<1x14x128xf32> to vector<1x8x128xf32>
      %364 = vector.extract_strided_slice %2 {offsets = [5, 6, 0], sizes = [1, 1, 128], strides = [1, 1, 1]} : vector<7x7x128xf32> to vector<1x1x128xf32>
      %365 = vector.shape_cast %364 : vector<1x1x128xf32> to vector<128xf32>
      %366 = vector.shape_cast %365 : vector<128xf32> to vector<1x1x128xf32>
      %367 = vector.broadcast %366 : vector<1x1x128xf32> to vector<1x8x128xf32>
      %368 = arith.mulf %363, %367 : vector<1x8x128xf32>
      %369 = arith.addf %362, %368 : vector<1x8x128xf32>
      %c6_i32 = arith.constant 6 : i32
      %370 = arith.addi %50, %c6_i32 : i32
      %c0_54 = arith.constant 0 : index
      %371 = arith.index_cast %370 : i32 to index
      %c0_55 = arith.constant 0 : index
      %c0_56 = arith.constant 0 : index
      %372 = vector.load %arg2[%c0_54, %371, %c0_55, %c0_56] : memref<1x14x14x128xf32, #tpu.memory_space<vmem>>, vector<1x1x14x128xf32>
      %373 = vector.shape_cast %372 : vector<1x1x14x128xf32> to vector<1x14x128xf32>
      %374 = vector.extract_strided_slice %373 {offsets = [0, 0, 0], sizes = [1, 8, 128], strides = [1, 1, 1]} : vector<1x14x128xf32> to vector<1x8x128xf32>
      %375 = vector.extract_strided_slice %2 {offsets = [6, 0, 0], sizes = [1, 1, 128], strides = [1, 1, 1]} : vector<7x7x128xf32> to vector<1x1x128xf32>
      %376 = vector.shape_cast %375 : vector<1x1x128xf32> to vector<128xf32>
      %377 = vector.shape_cast %376 : vector<128xf32> to vector<1x1x128xf32>
      %378 = vector.broadcast %377 : vector<1x1x128xf32> to vector<1x8x128xf32>
      %379 = arith.mulf %374, %378 : vector<1x8x128xf32>
      %380 = arith.addf %369, %379 : vector<1x8x128xf32>
      %381 = vector.extract_strided_slice %373 {offsets = [0, 1, 0], sizes = [1, 8, 128], strides = [1, 1, 1]} : vector<1x14x128xf32> to vector<1x8x128xf32>
      %382 = vector.extract_strided_slice %2 {offsets = [6, 1, 0], sizes = [1, 1, 128], strides = [1, 1, 1]} : vector<7x7x128xf32> to vector<1x1x128xf32>
      %383 = vector.shape_cast %382 : vector<1x1x128xf32> to vector<128xf32>
      %384 = vector.shape_cast %383 : vector<128xf32> to vector<1x1x128xf32>
      %385 = vector.broadcast %384 : vector<1x1x128xf32> to vector<1x8x128xf32>
      %386 = arith.mulf %381, %385 : vector<1x8x128xf32>
      %387 = arith.addf %380, %386 : vector<1x8x128xf32>
      %388 = vector.extract_strided_slice %373 {offsets = [0, 2, 0], sizes = [1, 8, 128], strides = [1, 1, 1]} : vector<1x14x128xf32> to vector<1x8x128xf32>
      %389 = vector.extract_strided_slice %2 {offsets = [6, 2, 0], sizes = [1, 1, 128], strides = [1, 1, 1]} : vector<7x7x128xf32> to vector<1x1x128xf32>
      %390 = vector.shape_cast %389 : vector<1x1x128xf32> to vector<128xf32>
      %391 = vector.shape_cast %390 : vector<128xf32> to vector<1x1x128xf32>
      %392 = vector.broadcast %391 : vector<1x1x128xf32> to vector<1x8x128xf32>
      %393 = arith.mulf %388, %392 : vector<1x8x128xf32>
      %394 = arith.addf %387, %393 : vector<1x8x128xf32>
      %395 = vector.extract_strided_slice %373 {offsets = [0, 3, 0], sizes = [1, 8, 128], strides = [1, 1, 1]} : vector<1x14x128xf32> to vector<1x8x128xf32>
      %396 = vector.extract_strided_slice %2 {offsets = [6, 3, 0], sizes = [1, 1, 128], strides = [1, 1, 1]} : vector<7x7x128xf32> to vector<1x1x128xf32>
      %397 = vector.shape_cast %396 : vector<1x1x128xf32> to vector<128xf32>
      %398 = vector.shape_cast %397 : vector<128xf32> to vector<1x1x128xf32>
      %399 = vector.broadcast %398 : vector<1x1x128xf32> to vector<1x8x128xf32>
      %400 = arith.mulf %395, %399 : vector<1x8x128xf32>
      %401 = arith.addf %394, %400 : vector<1x8x128xf32>
      %402 = vector.extract_strided_slice %373 {offsets = [0, 4, 0], sizes = [1, 8, 128], strides = [1, 1, 1]} : vector<1x14x128xf32> to vector<1x8x128xf32>
      %403 = vector.extract_strided_slice %2 {offsets = [6, 4, 0], sizes = [1, 1, 128], strides = [1, 1, 1]} : vector<7x7x128xf32> to vector<1x1x128xf32>
      %404 = vector.shape_cast %403 : vector<1x1x128xf32> to vector<128xf32>
      %405 = vector.shape_cast %404 : vector<128xf32> to vector<1x1x128xf32>
      %406 = vector.broadcast %405 : vector<1x1x128xf32> to vector<1x8x128xf32>
      %407 = arith.mulf %402, %406 : vector<1x8x128xf32>
      %408 = arith.addf %401, %407 : vector<1x8x128xf32>
      %409 = vector.extract_strided_slice %373 {offsets = [0, 5, 0], sizes = [1, 8, 128], strides = [1, 1, 1]} : vector<1x14x128xf32> to vector<1x8x128xf32>
      %410 = vector.extract_strided_slice %2 {offsets = [6, 5, 0], sizes = [1, 1, 128], strides = [1, 1, 1]} : vector<7x7x128xf32> to vector<1x1x128xf32>
      %411 = vector.shape_cast %410 : vector<1x1x128xf32> to vector<128xf32>
      %412 = vector.shape_cast %411 : vector<128xf32> to vector<1x1x128xf32>
      %413 = vector.broadcast %412 : vector<1x1x128xf32> to vector<1x8x128xf32>
      %414 = arith.mulf %409, %413 : vector<1x8x128xf32>
      %415 = arith.addf %408, %414 : vector<1x8x128xf32>
      %416 = vector.extract_strided_slice %373 {offsets = [0, 6, 0], sizes = [1, 8, 128], strides = [1, 1, 1]} : vector<1x14x128xf32> to vector<1x8x128xf32>
      %417 = vector.extract_strided_slice %2 {offsets = [6, 6, 0], sizes = [1, 1, 128], strides = [1, 1, 1]} : vector<7x7x128xf32> to vector<1x1x128xf32>
      %418 = vector.shape_cast %417 : vector<1x1x128xf32> to vector<128xf32>
      %419 = vector.shape_cast %418 : vector<128xf32> to vector<1x1x128xf32>
      %420 = vector.broadcast %419 : vector<1x1x128xf32> to vector<1x8x128xf32>
      %421 = arith.mulf %416, %420 : vector<1x8x128xf32>
      %422 = arith.addf %415, %421 : vector<1x8x128xf32>
      %423 = vector.shape_cast %422 : vector<1x8x128xf32> to vector<8x128xf32>
      %424 = vector.shape_cast %4 : vector<128xf32> to vector<1x128xf32>
      %425 = vector.broadcast %424 : vector<1x128xf32> to vector<8x128xf32>
      %426 = arith.addf %423, %425 : vector<8x128xf32>
      %cst_57 = arith.constant dense<0.000000e+00> : vector<8xf32>
      %427 = vector.multi_reduction <add>, %426, %cst_57 [1] : vector<8x128xf32> to vector<8xf32>
      %428 = vector.shape_cast %427 : vector<8xf32> to vector<8x1xf32>
      %cst_58 = arith.constant 3.125000e-02 : f32
      %429 = vector.broadcast %cst_58 : f32 to vector<8x1xf32>
      %430 = arith.mulf %428, %429 : vector<8x1xf32>
      %431 = arith.mulf %426, %426 : vector<8x128xf32>
      %cst_59 = arith.constant dense<0.000000e+00> : vector<8xf32>
      %432 = vector.multi_reduction <add>, %431, %cst_59 [1] : vector<8x128xf32> to vector<8xf32>
      %433 = vector.shape_cast %432 : vector<8xf32> to vector<8x1xf32>
      %cst_60 = arith.constant 3.125000e-02 : f32
      %434 = vector.broadcast %cst_60 : f32 to vector<8x1xf32>
      %435 = arith.mulf %433, %434 : vector<8x1xf32>
      %436 = arith.mulf %430, %430 : vector<8x1xf32>
      %437 = arith.subf %435, %436 : vector<8x1xf32>
      %438 = vector.broadcast %430 : vector<8x1xf32> to vector<8x128xf32>
      %439 = arith.subf %426, %438 : vector<8x128xf32>
      %cst_61 = arith.constant 9.99999997E-7 : f32
      %440 = vector.broadcast %cst_61 : f32 to vector<8x1xf32>
      %441 = arith.addf %437, %440 : vector<8x1xf32>
      %442 = math.rsqrt %441 : vector<8x1xf32>
      %443 = vector.broadcast %442 : vector<8x1xf32> to vector<8x128xf32>
      %444 = arith.mulf %439, %443 : vector<8x128xf32>
      %445 = vector.shape_cast %6 : vector<128xf32> to vector<1x128xf32>
      %446 = vector.broadcast %445 : vector<1x128xf32> to vector<8x128xf32>
      %447 = arith.mulf %444, %446 : vector<8x128xf32>
      %448 = vector.shape_cast %8 : vector<128xf32> to vector<1x128xf32>
      %449 = vector.broadcast %448 : vector<1x128xf32> to vector<8x128xf32>
      %450 = arith.addf %447, %449 : vector<8x128xf32>
      %c8_i32_62 = arith.constant 8 : i32
      %451 = arith.muli %arg15, %c8_i32_62 : i32
      %452 = tpu.assume_multiple %451, 8 : i32
      %453 = arith.truncf %450 : vector<8x128xf32> to vector<8x128xbf16>
      %454 = arith.index_cast %452 : i32 to index
      %c0_63 = arith.constant 0 : index
      %455 = vector.load %arg14[%454, %c0_63] : memref<64x128xbf16, #tpu.memory_space<vmem>>, vector<8x128xbf16>
      tpu.vector_store %arg14[%454, %c0_63], %453 {strides = array<i32>} : memref<64x128xbf16, #tpu.memory_space<vmem>>, vector<8x128xbf16>,
    }
    %c8_i32_9 = arith.constant 8 : i32
    %c0_10 = arith.constant 0 : index
    %c0_11 = arith.constant 0 : index
    %10 = vector.load %arg14[%c0_10, %c0_11] : memref<64x128xbf16, #tpu.memory_space<vmem>>, vector<64x128xbf16>
    %c0_12 = arith.constant 0 : index
    %c0_13 = arith.constant 0 : index
    %11 = vector.load %arg8[%c0_12, %c0_13] : memref<128x128xbf16, #tpu.memory_space<vmem>>, vector<128x128xbf16>
    %cst = arith.constant dense<0.000000e+00> : vector<64x128xf32>
    %12 = tpu.matmul %10, %11, %cst {dimension_numbers = #tpu.dot_dimension_numbers<[1], [0], [0], [1], [0, 0, 1, 1], [], []>} : vector<64x128xbf16>, vector<128x128xbf16>, vector<64x128xf32> -> vector<64x128xf32>
    %c0_14 = arith.constant 0 : index
    %c0_15 = arith.constant 0 : index
    %13 = vector.load %arg9[%c0_14, %c0_15] : memref<1x128xf32, #tpu.memory_space<vmem>>, vector<1x128xf32>
    %14 = vector.shape_cast %13 : vector<1x128xf32> to vector<128xf32>
    %15 = vector.shape_cast %14 : vector<128xf32> to vector<1x128xf32>
    %16 = vector.broadcast %15 : vector<1x128xf32> to vector<64x128xf32>
    %17 = arith.addf %12, %16 : vector<64x128xf32>
    %18 = arith.mulf %17, %17 : vector<64x128xf32>
    %19 = arith.mulf %17, %18 : vector<64x128xf32>
    %cst_16 = arith.constant 4.471500e-02 : f32
    %20 = vector.broadcast %cst_16 : f32 to vector<64x128xf32>
    %21 = arith.mulf %20, %19 : vector<64x128xf32>
    %22 = arith.addf %17, %21 : vector<64x128xf32>
    %cst_17 = arith.constant 0.797884583 : f32
    %23 = vector.broadcast %cst_17 : f32 to vector<64x128xf32>
    %24 = arith.mulf %23, %22 : vector<64x128xf32>
    %25 = math.tanh %24 : vector<64x128xf32>
    %cst_18 = arith.constant 1.000000e+00 : f32
    %26 = vector.broadcast %cst_18 : f32 to vector<64x128xf32>
    %27 = arith.addf %26, %25 : vector<64x128xf32>
    %cst_19 = arith.constant 5.000000e-01 : f32
    %28 = vector.broadcast %cst_19 : f32 to vector<64x128xf32>
    %29 = arith.mulf %28, %27 : vector<64x128xf32>
    %30 = arith.mulf %17, %29 : vector<64x128xf32>
    %31 = arith.truncf %30 : vector<64x128xf32> to vector<64x128xbf16>
    %c0_20 = arith.constant 0 : index
    %c0_21 = arith.constant 0 : index
    %32 = vector.load %arg10[%c0_20, %c0_21] : memref<128x128xbf16, #tpu.memory_space<vmem>>, vector<128x128xbf16>
    %cst_22 = arith.constant dense<0.000000e+00> : vector<64x128xf32>
    %33 = tpu.matmul %31, %32, %cst_22 {dimension_numbers = #tpu.dot_dimension_numbers<[1], [0], [0], [1], [0, 0, 1, 1], [], []>} : vector<64x128xbf16>, vector<128x128xbf16>, vector<64x128xf32> -> vector<64x128xf32>
    %c0_23 = arith.constant 0 : index
    %c0_24 = arith.constant 0 : index
    %34 = vector.load %arg11[%c0_23, %c0_24] : memref<1x128xf32, #tpu.memory_space<vmem>>, vector<1x128xf32>
    %35 = vector.shape_cast %34 : vector<1x128xf32> to vector<128xf32>
    %36 = vector.shape_cast %35 : vector<128xf32> to vector<1x128xf32>
    %37 = vector.broadcast %36 : vector<1x128xf32> to vector<64x128xf32>
    %38 = arith.addf %33, %37 : vector<64x128xf32>
    %c0_25 = arith.constant 0 : index
    %c0_26 = arith.constant 0 : index
    %c0_27 = arith.constant 0 : index
    %39 = vector.load %arg3[%c0_25, %c0_26, %c0_27] : memref<1x64x128xf32, #tpu.memory_space<vmem>>, vector<1x64x128xf32>
    %40 = vector.shape_cast %39 : vector<1x64x128xf32> to vector<64x128xf32>
    %c0_28 = arith.constant 0 : index
    %c0_29 = arith.constant 0 : index
    %41 = vector.load %arg12[%c0_28, %c0_29] : memref<1x128xf32, #tpu.memory_space<vmem>>, vector<1x128xf32>
    %42 = vector.shape_cast %41 : vector<1x128xf32> to vector<128xf32>
    %43 = vector.shape_cast %42 : vector<128xf32> to vector<1x128xf32>
    %44 = vector.broadcast %43 : vector<1x128xf32> to vector<64x128xf32>
    %45 = arith.mulf %38, %44 : vector<64x128xf32>
    %46 = arith.addf %40, %45 : vector<64x128xf32>
    %c0_30 = arith.constant 0 : index
    %c0_31 = arith.constant 0 : index
    %c0_32 = arith.constant 0 : index
    %47 = vector.load %arg13[%c0_30, %c0_31, %c0_32] : memref<1x64x128xf32, #tpu.memory_space<vmem>>, vector<1x64x128xf32>
    %48 = vector.shape_cast %47 : vector<1x64x128xf32> to vector<64x128xf32>
    %49 = vector.shape_cast %46 : vector<64x128xf32> to vector<1x64x128xf32>
    tpu.vector_store %arg13[%c0_30, %c0_31, %c0_32], %49 {strides = array<i32>} : memref<1x64x128xf32, #tpu.memory_space<vmem>>, vector<1x64x128xf32>,
    return
  }
  func.func @transform_0(%arg0: i32, %arg1: i32) -> (i32, i32, i32, i32) {
    %c0_i32 = arith.constant 0 : i32
    %c0_i32_0 = arith.constant 0 : i32
    %c0_i32_1 = arith.constant 0 : i32
    %c0_i32_2 = arith.constant 0 : i32
    return %arg0, %c0_i32, %c0_i32_0, %c0_i32_1 : i32, i32, i32, i32
  }
  func.func @transform_1(%arg0: i32, %arg1: i32) -> (i32, i32, i32) {
    %c0_i32 = arith.constant 0 : i32
    %c0_i32_0 = arith.constant 0 : i32
    return %arg0, %arg1, %c0_i32 : i32, i32, i32
  }
  func.func @transform_2(%arg0: i32, %arg1: i32) -> (i32, i32, i32) {
    %c0_i32 = arith.constant 0 : i32
    %c0_i32_0 = arith.constant 0 : i32
    %c0_i32_1 = arith.constant 0 : i32
    %c0_i32_2 = arith.constant 0 : i32
    return %c0_i32, %c0_i32_0, %c0_i32_1 : i32, i32, i32
  }
  func.func @transform_3(%arg0: i32, %arg1: i32) -> (i32, i32) {
    %c0_i32 = arith.constant 0 : i32
    %c0_i32_0 = arith.constant 0 : i32
    %c0_i32_1 = arith.constant 0 : i32
    return %c0_i32, %c0_i32_0 : i32, i32
  }
  func.func @transform_4(%arg0: i32, %arg1: i32) -> (i32, i32) {
    %c0_i32 = arith.constant 0 : i32
    %c0_i32_0 = arith.constant 0 : i32
    %c0_i32_1 = arith.constant 0 : i32
    return %c0_i32, %c0_i32_0 : i32, i32
  }
  func.func @transform_5(%arg0: i32, %arg1: i32) -> (i32, i32) {
    %c0_i32 = arith.constant 0 : i32
    %c0_i32_0 = arith.constant 0 : i32
    %c0_i32_1 = arith.constant 0 : i32
    return %c0_i32, %c0_i32_0 : i32, i32
  }
  func.func @transform_6(%arg0: i32, %arg1: i32) -> (i32, i32) {
    %c0_i32 = arith.constant 0 : i32
    %c0_i32_0 = arith.constant 0 : i32
    %c0_i32_1 = arith.constant 0 : i32
    return %c0_i32, %c0_i32_0 : i32, i32
  }
  func.func @transform_7(%arg0: i32, %arg1: i32) -> (i32, i32) {
    %c0_i32 = arith.constant 0 : i32
    %c0_i32_0 = arith.constant 0 : i32
    %c0_i32_1 = arith.constant 0 : i32
    return %c0_i32, %c0_i32_0 : i32, i32
  }
  func.func @transform_8(%arg0: i32, %arg1: i32) -> (i32, i32) {
    %c0_i32 = arith.constant 0 : i32
    %c0_i32_0 = arith.constant 0 : i32
    %c0_i32_1 = arith.constant 0 : i32
    return %c0_i32, %c0_i32_0 : i32, i32
  }
  func.func @transform_9(%arg0: i32, %arg1: i32) -> (i32, i32) {
    %c0_i32 = arith.constant 0 : i32
    %c0_i32_0 = arith.constant 0 : i32
    %c0_i32_1 = arith.constant 0 : i32
    return %c0_i32, %c0_i32_0 : i32, i32
  }
  func.func @transform_10(%arg0: i32, %arg1: i32) -> (i32, i32) {
    %c0_i32 = arith.constant 0 : i32
    %c0_i32_0 = arith.constant 0 : i32
    %c0_i32_1 = arith.constant 0 : i32
    return %c0_i32, %c0_i32_0 : i32, i32
  }
  func.func @transform_11(%arg0: i32, %arg1: i32) -> (i32, i32, i32) {
    %c0_i32 = arith.constant 0 : i32
    %c0_i32_0 = arith.constant 0 : i32
    return %arg0, %arg1, %c0_i32 : i32, i32, i32
  }
}

</mosaic_0001>

<bundles_post_ra>
// kernel: tpu_custom_call.1
= control target key start
LH: loop header
LB: loop body
LE: loop exit
PB: predicated region body
PF: predicated region fallthrough
CT: control target
= control target key end

     0   :  { %s2297_s0 = inlined_call_operand.vmem [shape: f32[2,14,14,128], index: 0, kind: input, shape index: {}]   ;;  %s2298_s1 = inlined_call_operand.vmem [shape: f32[2,64,128], index: 1, kind: input, shape index: {}]   ;;  %s2299_s2 = inlined_call_operand.vmem [shape: f32[7,7,128], index: 2, kind: input, shape index: {}]   ;;  %s2300_s3 = inlined_call_operand.vmem [shape: f32[1,128], index: 3, kind: input, shape index: {}]   ;;  %s2301_s4 = inlined_call_operand.vmem [shape: f32[1,128], index: 4, kind: input, shape index: {}]   ;;  %s2302_s5 = inlined_call_operand.vmem [shape: f32[1,128], index: 5, kind: input, shape index: {}]   ;;  %s2303_s6 = inlined_call_operand.vmem [shape: bf16[128,128], index: 6, kind: input, shape index: {}]   ;;  %s2304_s7 = inlined_call_operand.vmem [shape: f32[1,128], index: 7, kind: input, shape index: {}]   ;;  %s2305_s8 = inlined_call_operand.vmem [shape: bf16[128,128], index: 8, kind: input, shape index: {}]   ;;  %s2306_s9 = inlined_call_operand.vmem [shape: f32[1,128], index: 9, kind: input, shape index: {}]   ;;  %s2307_s10 = inlined_call_operand.vmem [shape: f32[1,128], index: 10, kind: input, shape index: {}]   ;;  %s2308_s11 = inlined_call_operand.hbm [shape: f32[2,64,128], index: 11, kind: output, shape index: {}]  }
   0x1   :  { %2312 = sst [smem:[#allocation9_spill]] %s2299_s2 }
   0x2   :  { %2313 = sst [smem:[#allocation10_spill]] %s2300_s3 }
   0x3   :  { %16 = vsyncpa [#allocation4], 0 }
   0x4   :  { %18 = vsyncpa [#allocation4 + $0x1], 0  ;;  %s1854_s17 = smov 0   ;;  %s1856_s18 = smov 0  }
   0x5   :  { %s1858_s19 = smov 0   ;;  %s1860_s20 = smov 0  }
   0x6   :  { %s1862_s21 = smov 0   ;;  %s1864_s22 = smov 0  }
   0x7 LB: > { %2314 = sst [smem:[#allocation6_spill]] %s1782_s21  ;;  %s1464_s23 = sadd.s32 4294967295, %s1786_s22   ;;  %s1786_s22 = sphi %s1864_s22, %s24_s22   ;;  %s1782_s21 = sphi %s1862_s21, %s2324_s21   ;;  %s1778_s20 = sphi %s1860_s20, %s2323_s20   ;;  %s1774_s19 = sphi %s1858_s19, %s2327_s19   ;;  %s1770_s18 = sphi %s1856_s18, %s2326_s18   ;;  %s1766_s17 = sphi %s1854_s17, %s2325_s17  }
   0x8   : > { %s1465_s24 = sadd.s32 4294967294, %s1786_s22   ;;  %s36_s25 = sadd.s32 1, %s1782_s21 }
   0x9   : > { %s288_s26 = sadd.s32 1, %s1774_s19  ;;  %p38_p0 = scmp.ge.s32.totalorder %s36_s25, 2 }
   0xa   : > { %p298_p1 = scmp.ne.s32.totalorder %s1774_s19, %s1770_s18  ;;  %p299_p2 = scmp.eq.s32.totalorder %s1464_s23, 1 }
   0xb   : > { %p304_p3 = scmp.ne.s32.totalorder %s1770_s18, %s1766_s17  ;;  %s2329_s25 = smov (%p38_p0, %s36_s25), 0 }
   0xc   : > { %2315 = sst [smem:[#allocation7_spill]] %s2329_s25  ;;  %p1894_p4 = por %p299_p2, %p298_p1 }
   0xd   : > { %p305_p5 = scmp.eq.s32.totalorder %s1465_s24, 1  ;;  %s283_s28 = ssub.s32 %s1782_s21, %s2329_s25 }
   0xe   : > { %p1468_p6 = scmp.ge.s32.totalorder %s1786_s22, 1  ;;  %p286_p7 = scmp.eq.s32.totalorder %s283_s28, 0 }
   0xf   : > { %p1901_p8 = por %p305_p5, %p304_p3  ;;  %p371_p9 = scmp.lt.s32.totalorder %s1786_s22, 3 }
  0x10   : > { %s1907_s30 = scalar_select %p286_p7, %s1774_s19, %s288_s26  }
  0x11   : > { %p372_p10 = pnand %p1468_p6, %p371_p9 }
  0x12   : > { %2318 = sst [smem:[#allocation8_spill]] %s1907_s30  ;;  %s2310_s12 = sand.u32 (!%p372_p10), 1, %s1770_s18  }
  0x13   : > { %375 = sbr.rel (%p372_p10) target bundleno = 635 (0x27b), region = 64  ;;  %p420_p11 = scmp.lt.s32.totalorder (!%p372_p10), %s1778_s20, 1 }
  0x14   : > { %s2319_s2 = sld [smem:[#allocation9_spill]] (!%p372_p10)  ;;  %s1469_s23 = sshll.u32 (!%p372_p10), %s2310_s12, 6 }
  0x15   : > { %s2320_s3 = sld [smem:[#allocation10_spill]] (!%p372_p10)  ;;  %s1974_s28 = scalar_lea.vmem (!%p372_p10), [#allocation3], %s1469_s23 }
  0x16   : > { %s1976_s13 = smov (!%p372_p10), 0  }
  0x18   : > { %s421_s12 = scalar_select %p420_p11, %s1778_s20, 1  ;;  %v1957_v8 = vld [vmem:[%s2301_s4] sm:$0x1] }
  0x19   : > { %v1962_v9 = vld [vmem:[%s2302_s5] sm:$0x1] }
  0x1a   : > { %v1914_v0 = vld [vmem:[%s2319_s2] sm:$0x7f]  ;;  %v1919_v1 = vld [vmem:[%s2319_s2 + $0x8] sm:$0x7f]  ;;  %v1926_v2 = vld [vmem:[%s2319_s2 + $0x10] sm:$0x7f] }
  0x1b   : > { %v1931_v3 = vld [vmem:[%s2319_s2 + $0x18] sm:$0x7f]  ;;  %v1936_v4 = vld [vmem:[%s2319_s2 + $0x20] sm:$0x7f]  ;;  %v1941_v5 = vld [vmem:[%s2319_s2 + $0x28] sm:$0x7f] }
  0x1c   : > { %v1947_v6 = vld [vmem:[%s2319_s2 + $0x30] sm:$0x7f]  ;;  %v1952_v7 = vld [vmem:[%s2320_s3] sm:$0x1]  ;;  %s1617_s16 = smul.u32 224, %s421_s12  ;;  %s1579_s30 = sshll.u32 %s421_s12, 6 }
  0x1d   : > { %s1967_s2 = scalar_lea.vmem %s2298_s1, %s1579_s30 }
  0x1e   : > { %s1972_s3 = scalar_lea.vmem %s2297_s0, %s1617_s16 }
  0x1f LB: >> { %v458_v10 = vperm.slane %v1914_v0, 0  ;;  %v461_v11 = vperm.slane %v1914_v0, 1  ;;  %v472_v12 = vperm.slane %v1914_v0, 2  ;;  %s1473_s30 = sshll.u32 %s1790_s13, 4  ;;  %vm466_vm0 = vcmask 1046528   ;;  %s1492_s23 = sshll.u32 %s1790_s13, 3  ;;  %s1790_s13 = sphi %s1976_s13, %s452_s13  }
  0x20   : >> { %v483_v13 = vperm.slane %v1914_v0, 3  ;;  %v494_v14 = vperm.slane %v1914_v0, 4  ;;  %s1988_s12 = scalar_lea.vmem %s1972_s3, %s1473_s30  ;;  %vm477_vm1 = vcmask 1045504   ;;  %vm488_vm2 = vcmask 1044480   ;;  %s971_s14 = sshra.s32 %s1492_s23, 3 }
  0x21   : >> { %vm499_vm3 = vcmask 1043456   ;;  %v505_v15 = vperm.slane %v1914_v0, 5  ;;  %v456_v16 = vld [vmem:[%s1988_s12] sm:$0xff]  ;;  %v457_v17 = vld [vmem:[%s1988_s12 + $0x8] sm:$0x3f]  ;;  %vm510_vm4 = vcmask 1042432  }
  0x22   : >> { %v516_v18 = vperm.slane %v1914_v0, 6  ;;  %v535_v19 = vperm.slane %v1919_v1, 1  ;;  %v545_v20 = vperm.slane %v1919_v1, 2  ;;  %v459_v21 = vmul.f32 %v458_v10, %v456_v16  ;;  %v1475_v41 = vld [vmem:[%s1988_s12 + $0x10] sm:$0xff]  ;;  %v1476_v45 = vld [vmem:[%s1988_s12 + $0x18] sm:$0x3f] }
  0x23   : >> { %v462_v22 = vmul.f32 %v461_v11, %v456_v16  ;;  %v463_v23 = vmul.f32 %v461_v11, %v457_v17  ;;  %v473_v24 = vmul.f32 %v472_v12, %v456_v16  ;;  %vm521_vm5 = vcmask 1041408   ;;  %s1493_s15 = sshll.u32 %s971_s14, 2  ;;  %s452_s13 = sadd.s32 1, %s1790_s13  }
  0x24   : >> { %v474_v25 = vmul.f32 %v472_v12, %v457_v17  ;;  %v484_v26 = vmul.f32 %v483_v13, %v456_v16  ;;  %v485_v27 = vmul.f32 %v483_v13, %v457_v17  ;;  %v495_v28 = vmul.f32 %v494_v14, %v456_v16  ;;  %s974_s16 = scalar_lea.vmem [#allocation2], %s1493_s15  ;;  %p449_p12 = scmp.ge.s32.totalorder %s452_s13, 8  }
  0x25   : >> { %v467_v29 = vrot.slane %v462_v22, 1  ;;  %v468_v30 = vrot.slane %v463_v23, 1  ;;  %v478_v31 = vrot.slane %v473_v24, 2  ;;  %v496_v32 = vmul.f32 %v494_v14, %v457_v17  ;;  %v1588_v0 = vld [vmem:[%s2303_s6 + $0x20] sm:$0xff] (%p449_p12)  ;;  %s1600_s26 = sshll.u32 (%p449_p12), %s1778_s20, 6  ;;  %s1329_s13 = sshll.u32 (%p449_p12), %s1974_s28, 4  ;;  %s1330_s13 = int_to_ptr.vmem [resolvable:$true] %s1329_s13 }
  0x26   : >> { %v479_v33 = vrot.slane %v474_v25, 2  ;;  %v489_v34 = vrot.slane %v484_v26, 3  ;;  %v490_v35 = vrot.slane %v485_v27, 3  ;;  %v500_v36 = vrot.slane %v495_v28, 4  ;;  %v1478_v28 = vld [vmem:[%s1988_s12 + $0x20] sm:$0xff]  ;;  %s2321_s3 = sand.u32 (%p449_p12), 1, %s1770_s18  }
  0x27   : >> { %v469_v37 = vsel %vm466_vm0, %v467_v29, %v468_v30  ;;  %v501_v38 = vrot.slane %v496_v32, 4  ;;  %v506_v39 = vmul.f32 %v505_v15, %v456_v16  ;;  %v507_v40 = vmul.f32 %v505_v15, %v457_v17  ;;  %v1479_v29 = vld [vmem:[%s1988_s12 + $0x28] sm:$0x3f]  ;;  %s1315_s14 = scalar_lea.sflag (%p449_p12), [#allocation4], %s2321_s3  ;;  %s1724_s24 = scalar_lea.hbm (%p449_p12), %s2308_s11, 128 }
  0x28   : >> { %v471_v42 = vadd.f32 %v469_v37, %v459_v21  ;;  %v480_v43 = vsel %vm477_vm1, %v478_v31, %v479_v33  ;;  %v517_v44 = vmul.f32 %v516_v18, %v456_v16  ;;  %v555_v46 = vperm.slane %v1919_v1, 3 }
  0x29   : >> { %v491_v47 = vsel %vm488_vm2, %v489_v34, %v490_v35  ;;  %v511_v48 = vrot.slane %v506_v39, 5  ;;  %v512_v49 = vrot.slane %v507_v40, 5  ;;  %v518_v50 = vmul.f32 %v516_v18, %v457_v17 }
  0x2a   : >> { %v482_v51 = vadd.f32 %v480_v43, %v471_v42  ;;  %v522_v52 = vrot.slane %v517_v44, 6  ;;  %v536_v53 = vmul.f32 %v1475_v41, %v535_v19  ;;  %v565_v54 = vperm.slane %v1919_v1, 4 }
  0x2b   : >> { %v502_v55 = vsel %vm499_vm3, %v500_v36, %v501_v38  ;;  %v523_v56 = vrot.slane %v518_v50, 6  ;;  %v537_v57 = vmul.f32 %v1476_v45, %v535_v19  ;;  %v546_v58 = vmul.f32 %v1475_v41, %v545_v20 }
  0x2c   : >> { %v493_v59 = vadd.f32 %v491_v47, %v482_v51  ;;  %v532_v60 = vperm.slane %v1919_v1, 0  ;;  %v547_v61 = vmul.f32 %v1476_v45, %v545_v20  ;;  %v513_v62 = vsel %vm510_vm4, %v511_v48, %v512_v49 }
  0x2d   : >> { %v540_v63 = vrot.slane %v536_v53, 1  ;;  %v556_v10 = vmul.f32 %v1475_v41, %v555_v46  ;;  %v524_v12 = vsel %vm521_vm5, %v522_v52, %v523_v56  ;;  %v541_v13 = vrot.slane %v537_v57, 1 }
  0x2e   : >> { %v504_v11 = vadd.f32 %v502_v55, %v493_v59  ;;  %v550_v14 = vrot.slane %v546_v58, 2  ;;  %v551_v15 = vrot.slane %v547_v61, 2  ;;  %v557_v16 = vmul.f32 %v1476_v45, %v555_v46 }
  0x2f   : >> { %v566_v17 = vmul.f32 %v1475_v41, %v565_v54  ;;  %v575_v18 = vperm.slane %v1919_v1, 5  ;;  %v533_v21 = vmul.f32 %v1475_v41, %v532_v60  ;;  %v567_v22 = vmul.f32 %v1476_v45, %v565_v54 }
  0x30   : >> { %v515_v19 = vadd.f32 %v513_v62, %v504_v11  ;;  %v585_v20 = vperm.slane %v1919_v1, 6  ;;  %v560_v23 = vrot.slane %v556_v10, 3  ;;  %v542_v25 = vsel %vm466_vm0, %v540_v63, %v541_v13  ;;  %v1587_v1 = vld [vmem:[%s2303_s6 + $0x18] sm:$0xff] (%p449_p12) }
  0x31   : >> { %v576_v26 = vmul.f32 %v1475_v41, %v575_v18  ;;  %v577_v27 = vmul.f32 %v1476_v45, %v575_v18  ;;  %v552_v30 = vsel %vm477_vm1, %v550_v14, %v551_v15  ;;  %v561_v31 = vrot.slane %v557_v16, 3  ;;  %v1481_v14 = vld [vmem:[%s1988_s12 + $0x30] sm:$0xff]  ;;  %v1482_v15 = vld [vmem:[%s1988_s12 + $0x38] sm:$0x3f] }
  0x32   : >> { %v526_v24 = vadd.f32 %v524_v12, %v515_v19  ;;  %v570_v32 = vrot.slane %v566_v17, 4  ;;  %v603_v33 = vperm.slane %v1926_v2, 1  ;;  %v571_v35 = vrot.slane %v567_v22, 4 }
  0x33   : >> { %v586_v36 = vmul.f32 %v1475_v41, %v585_v20  ;;  %v587_v37 = vmul.f32 %v1476_v45, %v585_v20  ;;  %v600_v38 = vperm.slane %v1926_v2, 0  ;;  %v613_v42 = vperm.slane %v1926_v2, 2 }
  0x34   : >> { %v534_v34 = vadd.f32 %v533_v21, %v526_v24  ;;  %v604_v39 = vmul.f32 %v1478_v28, %v603_v33  ;;  %v605_v40 = vmul.f32 %v1479_v29, %v603_v33  ;;  %v580_v44 = vrot.slane %v576_v26, 5 }
  0x35   : >> { %v581_v46 = vrot.slane %v577_v27, 5  ;;  %v623_v47 = vperm.slane %v1926_v2, 3  ;;  %v562_v48 = vsel %vm488_vm2, %v560_v23, %v561_v31  ;;  %v614_v49 = vmul.f32 %v1478_v28, %v613_v42 }
  0x36   : >> { %v544_v43 = vadd.f32 %v542_v25, %v534_v34  ;;  %v633_v50 = vperm.slane %v1926_v2, 4  ;;  %v572_v41 = vsel %vm499_vm3, %v570_v32, %v571_v35  ;;  %v590_v45 = vrot.slane %v586_v36, 6 }
  0x37   : >> { %v615_v52 = vmul.f32 %v1479_v29, %v613_v42  ;;  %v591_v53 = vrot.slane %v587_v37, 6  ;;  %v601_v54 = vmul.f32 %v1478_v28, %v600_v38  ;;  %v608_v55 = vrot.slane %v604_v39, 1 }
  0x38   : >> { %v554_v51 = vadd.f32 %v552_v30, %v544_v43  ;;  %v609_v56 = vrot.slane %v605_v40, 1  ;;  %v582_v58 = vsel %vm510_vm4, %v580_v44, %v581_v46  ;;  %v624_v59 = vmul.f32 %v1478_v28, %v623_v47 }
  0x39   : >> { %v625_v60 = vmul.f32 %v1479_v29, %v623_v47  ;;  %v618_v61 = vrot.slane %v614_v49, 2  ;;  %v634_v62 = vmul.f32 %v1478_v28, %v633_v50  ;;  %v643_v63 = vperm.slane %v1926_v2, 5 }
  0x3a   : >> { %v564_v57 = vadd.f32 %v562_v48, %v554_v51  ;;  %v653_v10 = vperm.slane %v1926_v2, 6  ;;  %v619_v12 = vrot.slane %v615_v52, 2  ;;  %v635_v13 = vmul.f32 %v1479_v29, %v633_v50  ;;  %v1586_v2 = vld [vmem:[%s2303_s6 + $0x10] sm:$0xff] (%p449_p12) }
  0x3b   : >> { %v671_v16 = vperm.slane %v1931_v3, 1  ;;  %v592_v17 = vsel %vm521_vm5, %v590_v45, %v591_v53  ;;  %v610_v18 = vsel %vm466_vm0, %v608_v55, %v609_v56  ;;  %v644_v19 = vmul.f32 %v1478_v28, %v643_v63 }
  0x3c   : >> { %v574_v11 = vadd.f32 %v572_v41, %v564_v57  ;;  %v645_v21 = vmul.f32 %v1479_v29, %v643_v63  ;;  %v628_v20 = vrot.slane %v624_v59, 3  ;;  %v654_v23 = vmul.f32 %v1478_v28, %v653_v10 }
  0x3d   : >> { %v655_v24 = vmul.f32 %v1479_v29, %v653_v10  ;;  %v629_v25 = vrot.slane %v625_v60, 3  ;;  %v638_v26 = vrot.slane %v634_v62, 4  ;;  %v672_v27 = vmul.f32 %v1481_v14, %v671_v16  ;;  %v2041_v10 = vld [vmem:[%s1988_s12 + $0x40] sm:$0xff] }
  0x3e   : >> { %v584_v22 = vadd.f32 %v582_v58, %v574_v11  ;;  %v673_v30 = vmul.f32 %v1482_v15, %v671_v16  ;;  %v620_v32 = vsel %vm477_vm1, %v618_v61, %v619_v12  ;;  %v639_v33 = vrot.slane %v635_v13, 4  ;;  %v2044_v11 = vld [vmem:[%s1988_s12 + $0x48] sm:$0x3f] }
  0x3f   : >> { %v681_v34 = vperm.slane %v1931_v3, 2  ;;  %v648_v35 = vrot.slane %v644_v19, 5  ;;  %v649_v36 = vrot.slane %v645_v21, 5  ;;  %v668_v37 = vperm.slane %v1931_v3, 0 }
  0x40   : >> { %v594_v31 = vadd.f32 %v592_v17, %v584_v22  ;;  %v691_v38 = vperm.slane %v1931_v3, 3  ;;  %v658_v40 = vrot.slane %v654_v23, 6  ;;  %v659_v28 = vrot.slane %v655_v24, 6 }
  0x41   : >> { %v701_v29 = vperm.slane %v1931_v3, 4  ;;  %v676_v42 = vrot.slane %v672_v27, 1  ;;  %v677_v43 = vrot.slane %v673_v30, 1  ;;  %v682_v44 = vmul.f32 %v1481_v14, %v681_v34 }
  0x42   : >> { %v602_v39 = vadd.f32 %v601_v54, %v594_v31  ;;  %v683_v46 = vmul.f32 %v1482_v15, %v681_v34  ;;  %v692_v48 = vmul.f32 %v1481_v14, %v691_v38  ;;  %v693_v49 = vmul.f32 %v1482_v15, %v691_v38 }
  0x43   : >> { %v630_v50 = vsel %vm488_vm2, %v628_v20, %v629_v25  ;;  %v640_v51 = vsel %vm499_vm3, %v638_v26, %v639_v33  ;;  %v669_v41 = vmul.f32 %v1481_v14, %v668_v37  ;;  %v711_v45 = vperm.slane %v1931_v3, 5 }
  0x44   : >> { %v612_v47 = vadd.f32 %v610_v18, %v602_v39  ;;  %v650_v53 = vsel %vm510_vm4, %v648_v35, %v649_v36  ;;  %v702_v54 = vmul.f32 %v1481_v14, %v701_v29  ;;  %v721_v55 = vperm.slane %v1931_v3, 6  ;;  %v1585_v3 = vld [vmem:[%s2303_s6 + $0x8] sm:$0xff] (%p449_p12) }
  0x45   : >> { %v660_v56 = vsel %vm521_vm5, %v658_v40, %v659_v28  ;;  %v678_v57 = vsel %vm466_vm0, %v676_v42, %v677_v43  ;;  %v686_v58 = vrot.slane %v682_v44, 2  ;;  %v687_v59 = vrot.slane %v683_v46, 2 }
  0x46   : >> { %v622_v52 = vadd.f32 %v620_v32, %v612_v47  ;;  %v696_v61 = vrot.slane %v692_v48, 3  ;;  %v697_v62 = vrot.slane %v693_v49, 3  ;;  %v703_v63 = vmul.f32 %v1482_v15, %v701_v29 }
  0x47   : >> { %v712_v12 = vmul.f32 %v1481_v14, %v711_v45  ;;  %v713_v13 = vmul.f32 %v1482_v15, %v711_v45  ;;  %v722_v16 = vmul.f32 %v1481_v14, %v721_v55  ;;  %v739_v17 = vperm.slane %v1936_v4, 1 }
  0x48   : >> { %v632_v60 = vadd.f32 %v630_v50, %v622_v52  ;;  %v706_v19 = vrot.slane %v702_v54, 4  ;;  %v723_v21 = vmul.f32 %v1482_v15, %v721_v55  ;;  %v749_v22 = vperm.slane %v1936_v4, 2 }
  0x49   : >> { %v688_v20 = vsel %vm477_vm1, %v686_v58, %v687_v59  ;;  %v740_v23 = vmul.f32 %v2041_v10, %v739_v17  ;;  %v741_v24 = vmul.f32 %v2044_v11, %v739_v17  ;;  %v759_v25 = vperm.slane %v1936_v4, 3  ;;  %v2073_v58 = vld [vmem:[%s1988_s12 + $0x58] sm:$0x3f] }
  0x4a   : >> { %v642_v18 = vadd.f32 %v640_v51, %v632_v60  ;;  %v707_v27 = vrot.slane %v703_v63, 4  ;;  %v750_v30 = vmul.f32 %v2041_v10, %v749_v22  ;;  %v751_v14 = vmul.f32 %v2044_v11, %v749_v22 }
  0x4b   : >> { %v716_v31 = vrot.slane %v712_v12, 5  ;;  %v717_v32 = vrot.slane %v713_v13, 5  ;;  %v726_v33 = vrot.slane %v722_v16, 6  ;;  %v736_v15 = vperm.slane %v1936_v4, 0 }
  0x4c   : >> { %v652_v26 = vadd.f32 %v650_v53, %v642_v18  ;;  %v727_v35 = vrot.slane %v723_v21, 6  ;;  %v744_v36 = vrot.slane %v740_v23, 1  ;;  %v769_v37 = vperm.slane %v1936_v4, 4 }
  0x4d   : >> { %v745_v38 = vrot.slane %v741_v24, 1  ;;  %v760_v39 = vmul.f32 %v2041_v10, %v759_v25  ;;  %v761_v40 = vmul.f32 %v2044_v11, %v759_v25  ;;  %v779_v28 = vperm.slane %v1936_v4, 5 }
  0x4e   : >> { %v662_v34 = vadd.f32 %v660_v56, %v652_v26  ;;  %v698_v42 = vsel %vm488_vm2, %v696_v61, %v697_v62  ;;  %v754_v43 = vrot.slane %v750_v30, 2  ;;  %v755_v44 = vrot.slane %v751_v14, 2  ;;  %v2070_v56 = vld [vmem:[%s1988_s12 + $0x50] sm:$0xff] }
  0x4f   : >> { %v708_v46 = vsel %vm499_vm3, %v706_v19, %v707_v27  ;;  %v770_v47 = vmul.f32 %v2041_v10, %v769_v37  ;;  %v771_v48 = vmul.f32 %v2044_v11, %v769_v37  ;;  %v780_v49 = vmul.f32 %v2041_v10, %v779_v28 }
  0x50   : >> { %v670_v29 = vadd.f32 %v669_v41, %v662_v34  ;;  %v718_v51 = vsel %vm510_vm4, %v716_v31, %v717_v32  ;;  %v728_v45 = vsel %vm521_vm5, %v726_v33, %v727_v35  ;;  %v737_v41 = vmul.f32 %v2041_v10, %v736_v15 }
  0x51   : >> { %v746_v52 = vsel %vm466_vm0, %v744_v36, %v745_v38  ;;  %v764_v53 = vrot.slane %v760_v39, 3  ;;  %v765_v54 = vrot.slane %v761_v40, 3  ;;  %v781_v55 = vmul.f32 %v2044_v11, %v779_v28 }
  0x52   : >> { %v680_v50 = vadd.f32 %v678_v57, %v670_v29  ;;  %v756_v60 = vsel %vm477_vm1, %v754_v43, %v755_v44  ;;  %v789_v57 = vperm.slane %v1936_v4, 6  ;;  %v807_v61 = vperm.slane %v1941_v5, 1  ;;  %v2099_v43 = vld [vmem:[%s1988_s12 + $0x60] sm:$0xff] }
  0x53   : >> { %v774_v62 = vrot.slane %v770_v47, 4  ;;  %v775_v63 = vrot.slane %v771_v48, 4  ;;  %v784_v12 = vrot.slane %v780_v49, 5  ;;  %v817_v13 = vperm.slane %v1941_v5, 2  ;;  %v1584_v4 = vld [vmem:[%s2303_s6] sm:$0xff] (%p449_p12) }
  0x54   : >> { %v690_v59 = vadd.f32 %v688_v20, %v680_v50  ;;  %v808_v17 = vmul.f32 %v2070_v56, %v807_v61  ;;  %v809_v18 = vmul.f32 %v2073_v58, %v807_v61  ;;  %v827_v19 = vperm.slane %v1941_v5, 3 }
  0x55   : >> { %v785_v21 = vrot.slane %v781_v55, 5  ;;  %v818_v22 = vmul.f32 %v2070_v56, %v817_v13  ;;  %v819_v20 = vmul.f32 %v2073_v58, %v817_v13  ;;  %v837_v23 = vperm.slane %v1941_v5, 4 }
  0x56   : >> { %v700_v16 = vadd.f32 %v698_v42, %v690_v59  ;;  %v812_v25 = vrot.slane %v808_v17, 1  ;;  %v813_v26 = vrot.slane %v809_v18, 1  ;;  %v828_v27 = vmul.f32 %v2070_v56, %v827_v19 }
  0x57   : >> { %v822_v30 = vrot.slane %v818_v22, 2  ;;  %v823_v14 = vrot.slane %v819_v20, 2  ;;  %v829_v31 = vmul.f32 %v2073_v58, %v827_v19  ;;  %v838_v32 = vmul.f32 %v2070_v56, %v837_v23 }
  0x58   : >> { %v710_v24 = vadd.f32 %v708_v46, %v700_v16  ;;  %v2089_v15 = vsel %vm466_vm0, %v812_v25, %v813_v26  ;;  %v832_v34 = vrot.slane %v828_v27, 3  ;;  %v839_v35 = vmul.f32 %v2073_v58, %v837_v23 }
  0x59   : >> { %v790_v36 = vmul.f32 %v2041_v10, %v789_v57  ;;  %v2094_v37 = vsel %vm477_vm1, %v822_v30, %v823_v14  ;;  %v833_v38 = vrot.slane %v829_v31, 3  ;;  %v842_v39 = vrot.slane %v838_v32, 4  ;;  %v2105_v10 = vld [vmem:[%s1988_s12 + $0x68] sm:$0x3f]  ;;  %s1328_s12 = scalar_lea.hbm (%p449_p12), %s2308_s11, %s1600_s26 }
  0x5a   : >> { %v720_v33 = vadd.f32 %v718_v51, %v710_v24  ;;  %v766_v28 = vsel %vm488_vm2, %v764_v53, %v765_v54  ;;  %v843_v29 = vrot.slane %v839_v35, 4  ;;  %v857_v42 = vperm.slane %v1941_v5, 6  ;;  %s1331_s23 = sshll.u32 (%p449_p12), %s1328_s12, 4  ;;  %s1332_s23 = int_to_ptr.hbm [resolvable:$true] %s1331_s23 }
  0x5b   : >> { %v791_v44 = vmul.f32 %v2044_v11, %v789_v57  ;;  %v804_v46 = vperm.slane %v1941_v5, 0  ;;  %v834_v47 = vsel %vm488_vm2, %v832_v34, %v833_v38  ;;  %v875_v48 = vperm.slane %v1947_v6, 1  ;;  %s1718_s20 = sshra.s32 (%p449_p12), %s1332_s23, 4  ;;  %s1719_s20 = int_to_ptr.hbm [resolvable:$true] %s1718_s20 }
  0x5c   : >> { %v730_v40 = vadd.f32 %v728_v45, %v720_v33  ;;  %v844_v50 = vsel %vm499_vm3, %v842_v39, %v843_v29  ;;  %v858_v51 = vmul.f32 %v2070_v56, %v857_v42  ;;  %v859_v45 = vmul.f32 %v2073_v58, %v857_v42  ;;  %s1720_s15 = scalar_lea.hbm (%p449_p12), %s1719_s20, 64  ;;  %p1725_p2 = scmp.lt.s32.totalorder (%p449_p12), %s1719_s20, %s2308_s11 }
  0x5d   : >> { %v776_v53 = vsel %vm499_vm3, %v774_v62, %v775_v63  ;;  %v786_v54 = vsel %vm510_vm4, %v784_v12, %v785_v21  ;;  %v794_v11 = vrot.slane %v790_v36, 6  ;;  %v876_v55 = vmul.f32 %v2099_v43, %v875_v48  ;;  %p1721_p13 = scmp.ne.s32.totalorder (%p449_p12), %s1719_s20, %s1720_s15  ;;  %p1726_p3 = scmp.lt.s32.totalorder (%p449_p12), %s1724_s24, %s1720_s15 }
  0x5e   : >> { %v738_v49 = vadd.f32 %v737_v41, %v730_v40  ;;  %v862_v57 = vrot.slane %v858_v51, 6  ;;  %v863_v61 = vrot.slane %v859_v45, 6  ;;  %v877_v13 = vmul.f32 %v2105_v10, %v875_v48 }
  0x5f   : >> { %v795_v16 = vrot.slane %v791_v44, 6  ;;  %v880_v41 = vrot.slane %v876_v55, 1  ;;  %v885_v17 = vperm.slane %v1947_v6, 2  ;;  %v895_v18 = vperm.slane %v1947_v6, 3  ;;  %p1722_p0 = pnand (%p449_p12), %p1721_p13, %p1894_p4  ;;  %p1727_p5 = por (%p449_p12), %p1726_p3, %p1725_p2 }
  0x60   : >> { %v748_v59 = vadd.f32 %v746_v52, %v738_v49  ;;  %v864_v22 = vsel %vm521_vm5, %v862_v57, %v863_v61  ;;  %v881_v62 = vrot.slane %v877_v13, 1  ;;  %v905_v63 = vperm.slane %v1947_v6, 4 }
  0x61   : >> { %v886_v12 = vmul.f32 %v2099_v43, %v885_v17  ;;  %v887_v52 = vmul.f32 %v2105_v10, %v885_v17  ;;  %v896_v21 = vmul.f32 %v2099_v43, %v895_v18  ;;  %v897_v20 = vmul.f32 %v2105_v10, %v895_v18  ;;  %p1723_p1 = pneg (%p449_p12), %p1722_p0 }
  0x62   : >> { %v758_v19 = vadd.f32 %v756_v60, %v748_v59  ;;  %v882_v24 = vsel %vm466_vm0, %v880_v41, %v881_v62  ;;  %v906_v25 = vmul.f32 %v2099_v43, %v905_v63  ;;  %v907_v60 = vmul.f32 %v2105_v10, %v905_v63 }
  0x63   : >> { %v890_v26 = vrot.slane %v886_v12, 2  ;;  %v891_v27 = vrot.slane %v887_v52, 2  ;;  %v900_v30 = vrot.slane %v896_v21, 3  ;;  %v901_v14 = vrot.slane %v897_v20, 3  ;;  %p1728_p6 = pnand (%p449_p12), %p1727_p5, %p1723_p1 }
  0x64   : >> { %v768_v23 = vadd.f32 %v766_v28, %v758_v19  ;;  %v796_v32 = vsel %vm521_vm5, %v794_v11, %v795_v16  ;;  %v910_v33 = vrot.slane %v906_v25, 4  ;;  %v911_v34 = vrot.slane %v907_v60, 4 }
  0x65   : >> { %v847_v35 = vperm.slane %v1941_v5, 5  ;;  %v892_v36 = vsel %vm477_vm1, %v890_v26, %v891_v27  ;;  %v902_v38 = vsel %vm488_vm2, %v900_v30, %v901_v14  ;;  %v925_v39 = vperm.slane %v1947_v6, 6 }
  0x66   : >> { %v778_v31 = vadd.f32 %v776_v53, %v768_v23  ;;  %v805_v28 = vmul.f32 %v2070_v56, %v804_v46  ;;  %v912_v29 = vsel %vm499_vm3, %v910_v33, %v911_v34  ;;  %v872_v13 = vperm.slane %v1947_v6, 0 }
  0x67   : >> { %v926_v42 = vmul.f32 %v2099_v43, %v925_v39  ;;  %v927_v44 = vmul.f32 %v2105_v10, %v925_v39  ;;  %v848_v49 = vmul.f32 %v2070_v56, %v847_v35  ;;  %v849_v51 = vmul.f32 %v2073_v58, %v847_v35 }
  0x68   : >> { %v788_v40 = vadd.f32 %v786_v54, %v778_v31  ;;  %v915_v56 = vperm.slane %v1947_v6, 5  ;;  %v873_v17 = vmul.f32 %v2099_v43, %v872_v13  ;;  %v936_v23 = vperm.slane %v1952_v7, 0 }
  0x69   : >> { %v930_v45 = vrot.slane %v926_v42, 6  ;;  %v931_v53 = vrot.slane %v927_v44, 6  ;;  %v852_v59 = vrot.slane %v848_v49, 5  ;;  %v853_v46 = vrot.slane %v849_v51, 5  ;;  %v1591_v49 = vld [vmem:[%s2303_s6 + $0x38] sm:$0xff] (%p449_p12)  ;;  %v1590_v51 = vld [vmem:[%s2303_s6 + $0x30] sm:$0xff] (%p449_p12) }
  0x6a   : >> { %v798_v48 = vadd.f32 %v796_v32, %v788_v40  ;;  %v916_v19 = vmul.f32 %v2099_v43, %v915_v56  ;;  %v962_v39 = vperm.slane %v1957_v8, 0  ;;  %1076 = vmatpush.bf16.msra.mxu0 (%p449_p12), %v1591_v49  ;;  %1601 = vmatpush.bf16.msra.mxu2 (%p449_p12), %v1591_v49 }
  0x6b   : >> { %v932_v55 = vsel %vm521_vm5, %v930_v45, %v931_v53  ;;  %v854_v16 = vsel %vm510_vm4, %v852_v59, %v853_v46  ;;  %v1589_v45 = vld [vmem:[%s2303_s6 + $0x28] sm:$0xff] (%p449_p12)  ;;  %v1598_v53 = vld [vmem:[%s2305_s8 + $0x30] sm:$0xff] (%p449_p12) }
  0x6c   : >> { %v806_v11 = vadd.f32 %v805_v28, %v798_v48  ;;  %v920_v12 = vrot.slane %v916_v19, 5  ;;  %v1594_v59 = vld [vmem:[%s2305_s8 + $0x10] sm:$0xff] (%p449_p12)  ;;  %v1593_v46 = vld [vmem:[%s2305_s8 + $0x8] sm:$0xff] (%p449_p12) }
  0x6e   : >> { %v816_v54 = vadd.f32 %v2089_v15, %v806_v11  ;;  %v917_v15 = vmul.f32 %v2105_v10, %v915_v56  ;;  %1077 = vmatpush.bf16.msra.mxu0 (%p449_p12), %v1590_v51  ;;  %1602 = vmatpush.bf16.msra.mxu2 (%p449_p12), %v1590_v51  ;;  %v1597_v11 = vld [vmem:[%s2305_s8 + $0x28] sm:$0xff] (%p449_p12) }
  0x70   : >> { %v826_v57 = vadd.f32 %v2094_v37, %v816_v54  ;;  %v921_v37 = vrot.slane %v917_v15, 5  ;;  %v1595_v54 = vld [vmem:[%s2305_s8 + $0x18] sm:$0xff] (%p449_p12) }
  0x72   : >> { %v836_v61 = vadd.f32 %v834_v47, %v826_v57  ;;  %v922_v21 = vsel %vm510_vm4, %v920_v12, %v921_v37  ;;  %1078 = vmatpush.bf16.msra.mxu0 (%p449_p12), %v1589_v45  ;;  %1603 = vmatpush.bf16.msra.mxu2 (%p449_p12), %v1589_v45  ;;  %v2202_v57 = vld [vmem:[%s2304_s7] ss:$0 sm:$0xff] (%p449_p12) }
  0x74   : >> { %v846_v41 = vadd.f32 %v844_v50, %v836_v61  ;;  %v1592_v61 = vld [vmem:[%s2305_s8] sm:$0xff] (%p449_p12) }
  0x76   : >> { %v856_v58 = vadd.f32 %v854_v16, %v846_v41  ;;  %1079 = vmatpush.bf16.msra.mxu0 (%p449_p12), %v1588_v0  ;;  %1604 = vmatpush.bf16.msra.mxu2 (%p449_p12), %v1588_v0 }
  0x78   : >> { %v866_v18 = vadd.f32 %v864_v22, %v856_v58 }
  0x7a   : >> { %v874_v62 = vadd.f32 %v873_v17, %v866_v18  ;;  %1080 = vmatpush.bf16.msra.mxu0 (%p449_p12), %v1587_v1  ;;  %1605 = vmatpush.bf16.msra.mxu2 (%p449_p12), %v1587_v1 }
  0x7c   : >> { %v884_v63 = vadd.f32 %v882_v24, %v874_v62 }
  0x7e   : >> { %v894_v47 = vadd.f32 %v892_v36, %v884_v63  ;;  %1081 = vmatpush.bf16.msra.mxu0 (%p449_p12), %v1586_v2  ;;  %1606 = vmatpush.bf16.msra.mxu2 (%p449_p12), %v1586_v2 }
  0x80   : >> { %v904_v52 = vadd.f32 %v902_v38, %v894_v47 }
  0x82   : >> { %v914_v20 = vadd.f32 %v912_v29, %v904_v52  ;;  %v966_v29 = vperm.slane %v1962_v9, 0  ;;  %1082 = vmatpush.bf16.msra.mxu0 (%p449_p12), %v1585_v3  ;;  %1607 = vmatpush.bf16.msra.mxu2 (%p449_p12), %v1585_v3  ;;  %v1599_v9 = vld [vmem:[%s2305_s8 + $0x38] sm:$0xff] (%p449_p12) }
  0x83   : > { %1249 = vmatpush.bf16.msra.mxu1 (%p449_p12), %v1599_v9  ;;  %1609 = vmatpush.bf16.msra.mxu3 (%p449_p12), %v1599_v9 }
  0x84   : >> { %v924_v50 = vadd.f32 %v922_v21, %v914_v20 }
  0x86   : >> { %v934_v25 = vadd.f32 %v932_v55, %v924_v50  ;;  %1083 = vmatpush.bf16.msra.mxu0 (%p449_p12), %v1584_v4  ;;  %1608 = vmatpush.bf16.msra.mxu2 (%p449_p12), %v1584_v4  ;;  %v1596_v55 = vld [vmem:[%s2305_s8 + $0x20] sm:$0xff] (%p449_p12) }
  0x87   : > { %1250 = vmatpush.bf16.msra.mxu1 (%p449_p12), %v1598_v53  ;;  %1610 = vmatpush.bf16.msra.mxu3 (%p449_p12), %v1598_v53 }
  0x88   : >> { %v938_v60 = vadd.f32 %v936_v23, %v934_v25 }
  0x8a   : >> { %939 = vadd.xlane.f32.xlu0 %v938_v60  ;;  %v942_v22 = vmul.f32 %v938_v60, %v938_v60 }
  0x8b   : > { %1251 = vmatpush.bf16.msra.mxu1 (%p449_p12), %v1597_v11  ;;  %1611 = vmatpush.bf16.msra.mxu3 (%p449_p12), %v1597_v11 }
  0x8f   : > { %1252 = vmatpush.bf16.msra.mxu1 (%p449_p12), %v1596_v55  ;;  %1612 = vmatpush.bf16.msra.mxu3 (%p449_p12), %v1596_v55 }
  0x92   : >> { %943 = vadd.xlane.f32.xlu0 %v942_v22 }
  0x93   : > { %1253 = vmatpush.bf16.msra.mxu1 (%p449_p12), %v1595_v54  ;;  %1613 = vmatpush.bf16.msra.mxu3 (%p449_p12), %v1595_v54 }
  0x97   : > { %1254 = vmatpush.bf16.msra.mxu1 (%p449_p12), %v1594_v59  ;;  %1614 = vmatpush.bf16.msra.mxu3 (%p449_p12), %v1594_v59 }
  0x9b   : > { %1255 = vmatpush.bf16.msra.mxu1 (%p449_p12), %v1593_v46  ;;  %1615 = vmatpush.bf16.msra.mxu3 (%p449_p12), %v1593_v46 }
  0x9f   : > { %1256 = vmatpush.bf16.msra.mxu1 (%p449_p12), %v1592_v61  ;;  %1616 = vmatpush.bf16.msra.mxu3 (%p449_p12), %v1592_v61 }
  0xfd   : >> { %v940_v43 = vpop.xlane.xlu0 %939 }
  0xfe   : >> { %v941_v10 = vmul.f32 0.03125, %v940_v43 }
 0x100   : >> { %v946_v27 = vmul.f32 %v941_v10, %v941_v10  ;;  %v948_v38 = vsub.f32 %v938_v60, %v941_v10 }
 0x105   : >> { %v944_v26 = vpop.xlane.xlu0 %943 }
 0x106   : >> { %v945_v24 = vmul.f32 0.03125, %v944_v26 }
 0x108   : >> { %v947_v30 = vsub.f32 %v945_v24, %v946_v27 }
 0x10a   : >> { %v949_v14 = vadd.f32 1e-06, %v947_v30 }
 0x10c   : >> { %1683 = vrsqrt.f32 %v949_v14  ;;  %vm956_vm7 = vweird.f32 %v949_v14 }
 0x112   : >> { %v1684_v31 = vpop.eup %1683 }
 0x113   : >> { %v951_v32 = vmul.f32 %v1684_v31, %v949_v14  ;;  %vm957_vm6 = vweird.f32 %v1684_v31 }
 0x114   : >> { %vm958_vm8 = vmor %vm956_vm7, %vm957_vm6 }
 0x115   : >> { %v952_v33 = vmul.f32 %v1684_v31, %v951_v32 }
 0x117   : >> { %v953_v34 = vmul.f32 0.5, %v952_v33 }
 0x119   : >> { %v954_v35 = vsub.f32 1.5, %v953_v34 }
 0x11b   : >> { %v955_v36 = vmul.f32 %v1684_v31, %v954_v35 }
 0x11d   : >> { %v959_v40 = vsel %vm958_vm8, %v1684_v31, %v955_v36 }
 0x11e   : >> { %v960_v28 = vmul.f32 %v959_v40, %v948_v38 }
 0x120   : >> { %v964_v42 = vmul.f32 %v962_v39, %v960_v28 }
 0x122   : >> { %v968_v44 = vadd.f32 %v966_v29, %v964_v42  ;;  %451 = sbr.rel (!%p449_p12) target bundleno = 31 (0x1f), region = 117 }
 0x124   : >> { %v970_v48 = vpack.c.bf16 %v968_v44, %v968_v44 }
 0x126   : >> { %975 = vst [vmem:[%s974_s16] sm:$0xf] %v970_v48 }
 0x12d   : > { %v1580_v5 = vld [vmem:[#allocation2] sm:$0xff]  ;;  %v1582_v6 = vld [vmem:[#allocation2 + $0x10] sm:$0xff]  ;;  %v1581_v7 = vld [vmem:[#allocation2 + $0x8] sm:$0xff] }
 0x12e   : > { %1084 = vmatmul.bf16.vlgmr.msra.gmra.mxu0 %v1580_v5  ;;  %1094 = vmatmul.bf16.vlgmr.msra.gmra.mxu2 %v1582_v6  ;;  %v1583_v8 = vld [vmem:[#allocation2 + $0x18] sm:$0xff] }
 0x13e   : > { %1089 = vmatmul.bf16.gmra.mxu0 %v1581_v7  ;;  %1099 = vmatmul.bf16.gmra.mxu2 %v1583_v8 }
 0x1ab   : > { %v1085_v13 = vpop.f32.mrf.mxu0 }
 0x1ac   : > { %v1086_v16 = vadd.f32 %v2202_v57, %v1085_v13 }
 0x1ae   : > { %v1105_v41 = vmul.f32 %v1086_v16, %v1086_v16 }
 0x1b0   : > { %v1113_v56 = vmul.f32 %v1105_v41, %v1086_v16 }
 0x1b1   : > { %v1095_v58 = vpop.f32.mrf.mxu2 }
 0x1b2   : > { %v1121_v17 = vmul.f32 0.044715, %v1113_v56  ;;  %v2209_v18 = vadd.f32 %v2202_v57, %v1095_v58 }
 0x1b3   : > { %v1087_v19 = vpop.f32.mrf.mxu0 }
 0x1b4   : > { %v1129_v15 = vadd.f32 %v1121_v17, %v1086_v16  ;;  %v1109_v62 = vmul.f32 %v2209_v18, %v2209_v18  ;;  %v1088_v63 = vadd.f32 %v2202_v57, %v1087_v19 }
 0x1b6   : > { %v1117_v12 = vmul.f32 %v1109_v62, %v2209_v18  ;;  %v1106_v37 = vmul.f32 %v1088_v63, %v1088_v63  ;;  %v1137_v47 = vmul.f32 0.7978846, %v1129_v15 }
 0x1b8   : > { %v1125_v52 = vmul.f32 0.044715, %v1117_v12  ;;  %v1114_v21 = vmul.f32 %v1106_v37, %v1088_v63  ;;  %1688 = vtanh.f32 %v1137_v47 }
 0x1b9   : > { %v1097_v20 = vpop.f32.mrf.mxu2 }
 0x1ba   : > { %v1133_v50 = vadd.f32 %v1125_v52, %v2209_v18  ;;  %v1122_v23 = vmul.f32 0.044715, %v1114_v21  ;;  %v1098_v25 = vadd.f32 %v2202_v57, %v1097_v20 }
 0x1bb   : > { %v1090_v60 = vpop.f32.mrf.mxu0 }
 0x1bc   : > { %v1130_v22 = vadd.f32 %v1122_v23, %v1088_v63  ;;  %v1110_v43 = vmul.f32 %v1098_v25, %v1098_v25  ;;  %v2218_v10 = vadd.f32 %v2202_v57, %v1090_v60  ;;  %v1141_v26 = vmul.f32 0.7978846, %v1133_v50 }
 0x1be   : > { %v1118_v24 = vmul.f32 %v1110_v43, %v1098_v25  ;;  %v1107_v27 = vmul.f32 %v2218_v10, %v2218_v10  ;;  %v1138_v30 = vmul.f32 0.7978846, %v1130_v22  ;;  %1690 = vtanh.f32 %v1141_v26  ;;  %v1689_v14 = vpop.eup %1688 }
 0x1bf   : > { %v1153_v39 = vadd.f32 1.0, %v1689_v14 }
 0x1c0   : > { %v1126_v31 = vmul.f32 0.044715, %v1118_v24  ;;  %v1115_v32 = vmul.f32 %v1107_v27, %v2218_v10  ;;  %1692 = vtanh.f32 %v1138_v30 }
 0x1c1   : > { %v1100_v33 = vpop.f32.mrf.mxu2  ;;  %v1161_v1 = vmul.f32 0.5, %v1153_v39 }
 0x1c2   : > { %v1134_v34 = vadd.f32 %v1126_v31, %v1098_v25  ;;  %v1123_v35 = vmul.f32 0.044715, %v1115_v32  ;;  %v2224_v36 = vadd.f32 %v2202_v57, %v1100_v33  ;;  %v1687_v31 = vld [vmem:[%s2307_s10] ss:$0 sm:$0xff] }
 0x1c3   : > { %v1092_v38 = vpop.f32.mrf.mxu0  ;;  %v1169_v53 = vmul.f32 %v1161_v1, %v1086_v16  ;;  %v1280_v1 = vld [vmem:[%s1967_s2 + $0x10] sm:$0xff] }
 0x1c4   : > { %v1131_v40 = vadd.f32 %v1123_v35, %v2218_v10  ;;  %v1111_v28 = vmul.f32 %v2224_v36, %v2224_v36  ;;  %v1093_v29 = vadd.f32 %v2202_v57, %v1092_v38  ;;  %v1142_v42 = vmul.f32 0.7978846, %v1134_v34  ;;  %v1691_v44 = vpop.eup %1690  ;;  %v1278_v34 = vld [vmem:[%s1967_s2] sm:$0xff] }
 0x1c5   : > { %v1157_v6 = vadd.f32 1.0, %v1691_v44 }
 0x1c6   : > { %v1693_v48 = vpop.eup %1692  ;;  %v1119_v49 = vmul.f32 %v1111_v28, %v2224_v36  ;;  %v1108_v51 = vmul.f32 %v1093_v29, %v1093_v29  ;;  %1694 = vtanh.f32 %v1142_v42  ;;  %v1139_v45 = vmul.f32 0.7978846, %v1131_v40  ;;  %v1279_v40 = vld [vmem:[%s1967_s2 + $0x8] sm:$0xff] }
 0x1c7   : > { %v1154_v0 = vadd.f32 1.0, %v1693_v48  ;;  %v1165_v41 = vmul.f32 0.5, %v1157_v6  ;;  %v1282_v48 = vld [vmem:[%s1967_s2 + $0x20] sm:$0xff]  ;;  %v1283_v6 = vld [vmem:[%s1967_s2 + $0x28] sm:$0xff] }
 0x1c8   : > { %v1127_v2 = vmul.f32 0.044715, %v1119_v49  ;;  %v1116_v3 = vmul.f32 %v1108_v51, %v1093_v29  ;;  %1696 = vtanh.f32 %v1139_v45 }
 0x1c9   : > { %v1102_v4 = vpop.f32.mrf.mxu2  ;;  %v1162_v5 = vmul.f32 0.5, %v1154_v0 }
 0x1ca   : > { %v1135_v7 = vadd.f32 %v1127_v2, %v2224_v36  ;;  %v1124_v8 = vmul.f32 0.044715, %v1116_v3  ;;  %v1103_v9 = vadd.f32 %v2202_v57, %v1102_v4  ;;  %v1173_v57 = vmul.f32 %v1165_v41, %v2209_v18 }
 0x1cb   : > { %v1170_v11 = vmul.f32 %v1162_v5, %v1088_v63 }
 0x1cc   : > { %v1695_v55 = vpop.eup %1694  ;;  %v1132_v54 = vadd.f32 %v1124_v8, %v1093_v29  ;;  %v1112_v59 = vmul.f32 %v1103_v9, %v1103_v9  ;;  %v1143_v46 = vmul.f32 0.7978846, %v1135_v7 }
 0x1cd   : > { %v1177_v61 = vpack.c.bf16 %v1170_v11, %v1169_v53  ;;  %v1158_v13 = vadd.f32 1.0, %v1695_v55  ;;  %v1281_v11 = vld [vmem:[%s1967_s2 + $0x18] sm:$0xff] }
 0x1ce   : > { %v1120_v56 = vmul.f32 %v1112_v59, %v1103_v9  ;;  %v1140_v58 = vmul.f32 0.7978846, %v1132_v54  ;;  %1698 = vtanh.f32 %v1143_v46  ;;  %v1697_v19 = vpop.eup %1696 }
 0x1cf   : > { %1257 = vmatmul.bf16.vlgmr.msra.gmra.mxu1 %v1177_v61  ;;  %v1166_v17 = vmul.f32 0.5, %v1158_v13  ;;  %v1155_v12 = vadd.f32 1.0, %v1697_v19  ;;  %v1284_v61 = vld [vmem:[%s1967_s2 + $0x30] sm:$0xff] }
 0x1d0   : > { %v1128_v15 = vmul.f32 0.044715, %v1120_v56  ;;  %1700 = vtanh.f32 %v1140_v58 }
 0x1d1   : > { %v1174_v62 = vmul.f32 %v1166_v17, %v1098_v25  ;;  %v1163_v20 = vmul.f32 0.5, %v1155_v12  ;;  %v1285_v17 = vld [vmem:[%s1967_s2 + $0x38] sm:$0xff] }
 0x1d2   : > { %v1136_v16 = vadd.f32 %v1128_v15, %v1103_v9 }
 0x1d3   : > { %v1179_v63 = vpack.c.bf16 %v1174_v62, %v1173_v57  ;;  %v1171_v60 = vmul.f32 %v1163_v20, %v2218_v10  ;;  %v1686_v10 = vld [vmem:[%s2306_s9] ss:$0 sm:$0xff] }
 0x1d4   : > { %v1144_v37 = vmul.f32 0.7978846, %v1136_v16  ;;  %v1699_v47 = vpop.eup %1698 }
 0x1d5   : > { %1267 = vmatmul.bf16.vlgmr.msra.gmra.mxu3 %v1179_v63  ;;  %v1159_v23 = vadd.f32 1.0, %v1699_v47 }
 0x1d6   : > { %v1701_v52 = vpop.eup %1700  ;;  %1702 = vtanh.f32 %v1144_v37 }
 0x1d7   : > { %v1156_v21 = vadd.f32 1.0, %v1701_v52  ;;  %v1167_v25 = vmul.f32 0.5, %v1159_v23 }
 0x1d9   : > { %v1164_v50 = vmul.f32 0.5, %v1156_v21  ;;  %v1175_v27 = vmul.f32 %v1167_v25, %v2224_v36 }
 0x1db   : > { %v1172_v22 = vmul.f32 %v1164_v50, %v1093_v29 }
 0x1dc   : > { %v1703_v43 = vpop.eup %1702 }
 0x1dd   : > { %v1178_v26 = vpack.c.bf16 %v1172_v22, %v1171_v60  ;;  %v1160_v18 = vadd.f32 1.0, %v1703_v43 }
 0x1df   : > { %1262 = vmatmul.bf16.gmra.mxu1 %v1178_v26  ;;  %v1168_v24 = vmul.f32 0.5, %v1160_v18 }
 0x1e1   : > { %v1176_v30 = vmul.f32 %v1168_v24, %v1103_v9 }
 0x1e3   : > { %v1180_v14 = vpack.c.bf16 %v1176_v30, %v1175_v27 }
 0x1e5   : > { %1272 = vmatmul.bf16.gmra.mxu3 %v1180_v14 }
 0x24c   : > { %v1258_v32 = vpop.f32.mrf.mxu1 }
 0x24d   : > { %v1259_v33 = vadd.f32 %v1686_v10, %v1258_v32 }
 0x24f   : > { %v1290_v35 = vmul.f32 %v1687_v31, %v1259_v33 }
 0x251   : > { %v1298_v38 = vadd.f32 %v1290_v35, %v1278_v34 }
 0x253   : > { %1306 = vst [vmem:[%s1974_s28] sm:$0xff] %v1298_v38 }
 0x254   : > { %v1260_v36 = vpop.f32.mrf.mxu1 }
 0x255   : > { %v1261_v39 = vadd.f32 %v1686_v10, %v1260_v36 }
 0x257   : > { %v1291_v28 = vmul.f32 %v1687_v31, %v1261_v39 }
 0x258   : > { %v1268_v29 = vpop.f32.mrf.mxu3 }
 0x259   : > { %v1299_v42 = vadd.f32 %v1291_v28, %v1279_v40  ;;  %v1269_v44 = vadd.f32 %v1686_v10, %v1268_v29 }
 0x25b   : > { %1307 = vst [vmem:[%s1974_s28 + $0x8] sm:$0xff] %v1299_v42  ;;  %v1294_v49 = vmul.f32 %v1687_v31, %v1269_v44 }
 0x25c   : > { %v1263_v51 = vpop.f32.mrf.mxu1 }
 0x25d   : > { %v1302_v45 = vadd.f32 %v1294_v49, %v1282_v48  ;;  %v1264_v0 = vadd.f32 %v1686_v10, %v1263_v51 }
 0x25f   : > { %1310 = vst [vmem:[%s1974_s28 + $0x20] sm:$0xff] %v1302_v45  ;;  %v1292_v2 = vmul.f32 %v1687_v31, %v1264_v0 }
 0x260   : > { %v1270_v3 = vpop.f32.mrf.mxu3 }
 0x261   : > { %v1300_v4 = vadd.f32 %v1292_v2, %v1280_v1  ;;  %v1271_v5 = vadd.f32 %v1686_v10, %v1270_v3 }
 0x263   : > { %1308 = vst [vmem:[%s1974_s28 + $0x10] sm:$0xff] %v1300_v4  ;;  %v1295_v7 = vmul.f32 %v1687_v31, %v1271_v5 }
 0x264   : > { %v1265_v8 = vpop.f32.mrf.mxu1 }
 0x265   : > { %v1303_v9 = vadd.f32 %v1295_v7, %v1283_v6  ;;  %v1266_v53 = vadd.f32 %v1686_v10, %v1265_v8 }
 0x267   : > { %1311 = vst [vmem:[%s1974_s28 + $0x28] sm:$0xff] %v1303_v9  ;;  %v1293_v55 = vmul.f32 %v1687_v31, %v1266_v53 }
 0x268   : > { %v1273_v54 = vpop.f32.mrf.mxu3 }
 0x269   : > { %v1301_v59 = vadd.f32 %v1293_v55, %v1281_v11  ;;  %v1274_v46 = vadd.f32 %v1686_v10, %v1273_v54 }
 0x26b   : > { %1309 = vst [vmem:[%s1974_s28 + $0x18] sm:$0xff] %v1301_v59  ;;  %v1296_v13 = vmul.f32 %v1687_v31, %v1274_v46 }
 0x26d   : > { %v1304_v41 = vadd.f32 %v1296_v13, %v1284_v61 }
 0x26f   : > { %1312 = vst [vmem:[%s1974_s28 + $0x30] sm:$0xff] %v1304_v41 }
 0x270   : > { %v1275_v56 = vpop.f32.mrf.mxu3 }
 0x271   : > { %v1276_v58 = vadd.f32 %v1686_v10, %v1275_v56 }
 0x273   : > { %v1297_v19 = vmul.f32 %v1687_v31, %v1276_v58 }
 0x275   : > { %v1305_v15 = vadd.f32 %v1297_v19, %v1285_v17 }
 0x277   : > { %1313 = vst [vmem:[%s1974_s28 + $0x38] sm:$0xff] %v1305_v15 }
 0x278   : > { %1731 = shalt.err (!%p1728_p6)
}
 0x279   : > { %s1792_s28 = smov 128   ;;  %s1793_s25 = smov 8  }
 0x27a   : > { %1618 = dma.vmem_to_hbm [thread:$0]  (%p1894_p4), %s1330_s13, 1024, %s1332_s23, %s1315_s14, %s1792_s28, %s1792_s28, %s1793_s25  }
 0x27b PF: > { %p1624_p7 = scmp.ge.s32.totalorder %s1786_s22, 2  ;;  %s1346_s30 = sand.u32 1, %s1766_s17  }
 0x27c   : > { %s1347_s12 = scalar_lea.sflag [#allocation4], %s1346_s30 }
 0x27d   : > { %p1621_p9 = pnand %p1624_p7, %p1901_p8 }
 0x27f   : > { %p1622_p10 = pneg %p1621_p9 }
 0x281   : > { %1761 = dma.done.wait (%p1622_p10), %s1347_s12, 1024  }
 0x282   : > { %1763 = vsyncadd (%p1622_p10), %s1347_s12, 4294966272  ;;  %s24_s22 = sadd.s32 1, %s1786_s22   ;;  %s2322_s3 = sld [smem:[#allocation8_spill]] }
 0x283   : > { %p21_p11 = scmp.ge.s32.totalorder %s24_s22, 4   ;;  %s2323_s20 = sld [smem:[#allocation6_spill]] }
 0x284   : > { %s2324_s21 = sld [smem:[#allocation7_spill]]  ;;  %s2325_s17 = smov %s1770_s18 }
 0x285   : > { %s2326_s18 = smov %s1774_s19  ;;  %23 = sbr.rel (!%p21_p11) target bundleno = 7 (0x7), region = 128 }
 0x288   : > { %s2327_s19 = smov %s2322_s3 }
 0x28a   :  { %1353 = vsyncpa [#allocation4], 1 }
 0x28b   :  { %1355 = vsyncpa [#allocation4 + $0x1], 1 }

</bundles_post_ra>
